<compile_context>
chip_gen: v7x
topology: tpu7x:2x2x1
jax: 0.10.0
libtpu: 0.0.40
codegen_flags: <defaults>
</compile_context>

<pallas_src>
import functools

import jax
import jax.numpy as jnp
from jax.experimental import pallas as pl
from jax.experimental.pallas import tpu as pltpu

_LANE = 128


# ------------------------------- helpers ------------------------------------


def _round_up(x, m):
    return (x + m - 1) // m * m


def _pad_to(a, shape):
    """Zero-pad each axis at the end so that a.shape becomes `shape`."""
    pads = [(0, t - s) for s, t in zip(a.shape, shape)]
    return jnp.pad(a, pads)


def _fold_bn(gamma, beta, mean, var, eps=1e-5):
    scale = gamma / jnp.sqrt(var + eps)
    bias = beta - mean * scale
    return scale, bias


def _compiler_params(semantics):
    # parallel axes shard across the two TensorCores on v7x; harmless on v5e/v6e.
    return pltpu.CompilerParams(dimension_semantics=semantics,
                                vmem_limit_bytes=32 * 1024 * 1024)


def _pick_row_block(H, W, cin_p, cout_p, budget_bytes=4 * 1024 * 1024):
    """Largest divisor of H such that an activation tile stays ~budget_bytes."""
    if W % 8 != 0:
        return 1
    row_bytes = 4 * (cin_p + cout_p)
    rows = max(8, budget_bytes // row_bytes)
    th = max(1, min(H, rows // max(W, 1)))
    while H % th:
        th -= 1
    return th


def _cost(flops, bytes_accessed):
    return pl.CostEstimate(flops=int(flops), transcendentals=0,
                           bytes_accessed=int(bytes_accessed))


# ------------------------------- kernel 1 ------------------------------------
# a2 = relu(bn2(conv1(relu(bn1(x)))))   (bn2 scale pre-folded into w1)


def _conv1_kernel(x_ref, w1_ref, s1_ref, b1_ref, b2_ref, o_ref, *, compute_dtype):
    _, th, w, cin = x_ref.shape
    x = x_ref[...].reshape(th * w, cin)                       # f32
    pre = jnp.maximum(x * s1_ref[...] + b1_ref[...], 0.0)     # relu(bn1(x)) in f32
    acc = jnp.dot(pre.astype(compute_dtype), w1_ref[...],
                  preferred_element_type=jnp.float32)         # MXU, f32 accumulate
    a2 = jnp.maximum(acc + b2_ref[...], 0.0)                  # relu(bn2(.)) (scale folded)
    o_ref[...] = a2.astype(o_ref.dtype).reshape(1, th, w, -1)


def _conv1_bn_relu(x4, w1f, s1, b1, b2, *, compute_dtype, row_block):
    N, H, W, cin_p = x4.shape
    p_p = w1f.shape[1]
    th = row_block
    itemsize = jnp.dtype(compute_dtype).itemsize
    flops = 2 * N * H * W * cin_p * p_p + 4 * N * H * W * (cin_p + p_p)
    bytes_acc = (x4.size * 4 + N * H * W * p_p * itemsize + w1f.size * itemsize
                 + (s1.size + b1.size + b2.size) * 4)
    kernel = functools.partial(_conv1_kernel, compute_dtype=compute_dtype)
    return pl.pallas_call(
        kernel,
        out_shape=jax.ShapeDtypeStruct((N, H, W, p_p), compute_dtype),
        grid=(N, H // th),
        in_specs=[
            pl.BlockSpec((1, th, W, cin_p), lambda n, h: (n, h, 0, 0)),
            pl.BlockSpec((cin_p, p_p), lambda n, h: (0, 0)),
            pl.BlockSpec((1, cin_p), lambda n, h: (0, 0)),
            pl.BlockSpec((1, cin_p), lambda n, h: (0, 0)),
            pl.BlockSpec((1, p_p), lambda n, h: (0, 0)),
        ],
        out_specs=pl.BlockSpec((1, th, W, p_p), lambda n, h: (n, h, 0, 0)),
        compiler_params=_compiler_params(("parallel", "parallel")),
        cost_estimate=_cost(flops, bytes_acc),
    )(x4, w1f, s1, b1, b2)


# ------------------------------- kernel 2 ------------------------------------
# out = conv3(relu(bn3(conv2(a2)))) + shortcut     (bn3 scale pre-folded into w2)


def _conv23_kernel(planes_ref, w2_ref, b3_ref, w3_ref, xs_ref, s1_ref, b1_ref,
                   *rest, stride, has_proj, compute_dtype):
    if has_proj:
        ws_ref, o_ref = rest
    else:
        (o_ref,) = rest
    _, Ho, Wo, _ = o_ref.shape
    p_p = w2_ref.shape[1]

    # 3x3 conv (stride handled via parity planes): 9 shifted-window matmuls.
    acc = jnp.zeros((Ho * Wo, p_p), jnp.float32)
    for dy in range(3):
        for dx in range(3):
            p = (dy % stride) * stride + (dx % stride)
            y0, x0 = dy // stride, dx // stride
            win = planes_ref[p, y0:y0 + Ho, x0:x0 + Wo, :]
            acc = acc + jnp.dot(win.reshape(Ho * Wo, p_p), w2_ref[dy * 3 + dx],
                                preferred_element_type=jnp.float32)
    a3 = jnp.maximum(acc + b3_ref[...], 0.0)                  # relu(bn3(.)) (scale folded)

    # conv3 (1x1)
    out = jnp.dot(a3.astype(compute_dtype), w3_ref[...],
                  preferred_element_type=jnp.float32)

    # shortcut = (optional 1x1 strided conv of) relu(bn1(x)) at the strided positions
    xs = xs_ref[...].reshape(Ho * Wo, xs_ref.shape[-1])
    pre_s = jnp.maximum(xs * s1_ref[...] + b1_ref[...], 0.0)
    if has_proj:
        sc = jnp.dot(pre_s.astype(compute_dtype), ws_ref[...],
                     preferred_element_type=jnp.float32)
    else:
        sc = pre_s

    # residual add; NO final ReLU (pre-activation block).
    o_ref[...] = (out + sc).astype(o_ref.dtype).reshape(1, Ho, Wo, -1)


def _conv23_residual(planes, w2f, b3, w3f, xs4, s1, b1, wsf, *, stride, compute_dtype):
    N, Ho, Wo, cin_p = xs4.shape
    taps = stride * stride
    Hp, Wp = planes.shape[1], planes.shape[2]
    p_p = w2f.shape[1]
    cout_p = w3f.shape[1]
    has_proj = wsf is not None
    itemsize = jnp.dtype(compute_dtype).itemsize

    flops = N * Ho * Wo * (2 * 9 * p_p * p_p + 2 * p_p * cout_p
                           + (2 * cin_p * cout_p if has_proj else 0))
    bytes_acc = (planes.size * itemsize + xs4.size * 4 + N * Ho * Wo * cout_p * 4
                 + (w2f.size + w3f.size + (wsf.size if has_proj else 0)) * itemsize
                 + (b3.size + s1.size + b1.size) * 4)

    kernel = functools.partial(_conv23_kernel, stride=stride, has_proj=has_proj,
                               compute_dtype=compute_dtype)
    in_specs = [
        pl.BlockSpec((taps, Hp, Wp, p_p), lambda n: (n, 0, 0, 0)),
        pl.BlockSpec((9, p_p, p_p), lambda n: (0, 0, 0)),
        pl.BlockSpec((1, p_p), lambda n: (0, 0)),
        pl.BlockSpec((p_p, cout_p), lambda n: (0, 0)),
        pl.BlockSpec((1, Ho, Wo, cin_p), lambda n: (n, 0, 0, 0)),
        pl.BlockSpec((1, cin_p), lambda n: (0, 0)),
        pl.BlockSpec((1, cin_p), lambda n: (0, 0)),
    ]
    args = [planes, w2f, b3, w3f, xs4, s1, b1]
    if has_proj:
        in_specs.append(pl.BlockSpec((cin_p, cout_p), lambda n: (0, 0)))
        args.append(wsf)

    return pl.pallas_call(
        kernel,
        out_shape=jax.ShapeDtypeStruct((N, Ho, Wo, cout_p), jnp.float32),
        grid=(N,),
        in_specs=in_specs,
        out_specs=pl.BlockSpec((1, Ho, Wo, cout_p), lambda n: (n, 0, 0, 0)),
        compiler_params=_compiler_params(("parallel",)),
        cost_estimate=_cost(flops, bytes_acc),
    )(*args)


# ------------------------------ forward pass ---------------------------------


def bottleneck_forward(x_nchw, params, stride, compute_dtype=jnp.float32):
    N, Cin, H, W = x_nchw.shape
    P = params["w1"].shape[0]              # planes
    Cout = params["w3"].shape[0]           # expansion * planes
    has_proj = "ws" in params

    Ho = (H + 2 - 3) // stride + 1
    Wo = (W + 2 - 3) // stride + 1
    assert H % stride == 0 and W % stride == 0, "spatial dims must divide stride"
    # TODO(synk): widths that are not multiples of 8 need an in-kernel relayout path.
    assert W % 8 == 0 and Wo % 8 == 0, "W and Wo must be multiples of 8"

    cin_p = _round_up(Cin, _LANE)
    p_p = _round_up(P, _LANE)
    cout_p = _round_up(Cout, _LANE)

    # --- fold BN (inference mode) and prepare lane-padded weights ---
    s1, b1 = _fold_bn(*params["bn1"])
    s2, b2 = _fold_bn(*params["bn2"])
    s3, b3 = _fold_bn(*params["bn3"])

    w1 = params["w1"].reshape(P, Cin).T * s2[None, :]                     # fold bn2 scale
    w2 = jnp.transpose(params["w2"], (2, 3, 1, 0)).reshape(9, P, P) * s3[None, None, :]
    w3 = params["w3"].reshape(Cout, P).T

    w1f = _pad_to(w1, (cin_p, p_p)).astype(compute_dtype)
    w2f = _pad_to(w2, (9, p_p, p_p)).astype(compute_dtype)
    w3f = _pad_to(w3, (p_p, cout_p)).astype(compute_dtype)
    wsf = None
    if has_proj:
        ws = params["ws"].reshape(Cout, Cin).T
        wsf = _pad_to(ws, (cin_p, cout_p)).astype(compute_dtype)

    s1p = _pad_to(s1.reshape(1, Cin), (1, cin_p))
    b1p = _pad_to(b1.reshape(1, Cin), (1, cin_p))
    b2p = _pad_to(b2.reshape(1, P), (1, p_p))
    b3p = _pad_to(b3.reshape(1, P), (1, p_p))

    # --- NHWC, channel-padded input (epilogue/prologue math stays in f32) ---
    x4 = _pad_to(jnp.transpose(x_nchw, (0, 2, 3, 1)), (N, H, W, cin_p))

    # --- kernel 1 ---
    row_block = _pick_row_block(H, W, cin_p, p_p)
    a2 = _conv1_bn_relu(x4, w1f, s1p, b1p, b2p,
                        compute_dtype=compute_dtype, row_block=row_block)

    # --- zero-padded a2; for stride>1 split into stride-parity planes so the 3x3 taps
    #     become contiguous windows (avoids the 9x im2col HBM blow-up).  For stride==1
    #     the padded tensor is passed through directly (no stack/copy). ---
    a2p = jnp.pad(a2, ((0, 0), (1, 1), (1, 1), (0, 0)))
    if stride == 1:
        planes = a2p                                          # (N, H+2, W+2, p_p), taps=1
    else:
        planes = jnp.stack(
            [a2p[:, py::stride, px::stride, :]
             for py in range(stride) for px in range(stride)], axis=1)
        planes = planes.reshape(N * stride * stride, *planes.shape[2:])

    # shortcut input at the strided spatial positions.
    # TODO(synk): could be read strided in-kernel (pl.ds stride) to skip this XLA slice.
    xs4 = x4 if stride == 1 else x4[:, ::stride, ::stride, :]

    # --- kernel 2: conv2(+bn3+relu) + conv3 + shortcut + residual add, fused ---
    out = _conv23_residual(planes, w2f, b3p, w3f, xs4, s1p, b1p, wsf,
                           stride=stride, compute_dtype=compute_dtype)

    out = out[:, :, :, :Cout]
    return jnp.transpose(out, (0, 3, 1, 2))    # back to NCHW


# ------------------------- pure-JAX reference check --------------------------


def reference_forward(x, params, stride, eps=1e-5):
    def bn(y, p):
        g, b, m, v = (a[None, :, None, None] for a in p)
        return g * (y - m) / jnp.sqrt(v + eps) + b

    dn = ("NCHW", "OIHW", "NCHW")
    pre = jax.nn.relu(bn(x, params["bn1"]))
    if "ws" in params:
        sc = jax.lax.conv_general_dilated(pre, params["ws"], (stride, stride),
                                          "VALID", dimension_numbers=dn)
    else:
        sc = pre
    out = jax.lax.conv_general_dilated(pre, params["w1"], (1, 1), "VALID",
                                       dimension_numbers=dn)
    out = jax.nn.relu(bn(out, params["bn2"]))
    out = jax.lax.conv_general_dilated(out, params["w2"], (stride, stride),
                                       ((1, 1), (1, 1)), dimension_numbers=dn)
    out = jax.nn.relu(bn(out, params["bn3"]))
    out = jax.lax.conv_general_dilated(out, params["w3"], (1, 1), "VALID",
                                       dimension_numbers=dn)
    return out + sc


# --------------------------------- params ------------------------------------


def make_params(key, in_planes, planes, stride, expansion=4):
    ks = jax.random.split(key, 8)

    def conv_w(k, shape):
        return 0.1 * jax.random.normal(k, shape, jnp.float32)

    def bn_p(k, c):
        k1, k2, k3, k4 = jax.random.split(k, 4)
        gamma = 0.5 + jax.random.uniform(k1, (c,), jnp.float32)
        beta = 0.1 * jax.random.normal(k2, (c,), jnp.float32)
        mean = 0.1 * jax.random.normal(k3, (c,), jnp.float32)
        var = 0.5 + jax.random.uniform(k4, (c,), jnp.float32)
        return (gamma, beta, mean, var)

    cout = expansion * planes
    params = {
        "w1": conv_w(ks[0], (planes, in_planes, 1, 1)),
        "w2": conv_w(ks[1], (planes, planes, 3, 3)),
        "w3": conv_w(ks[2], (cout, planes, 1, 1)),
        "bn1": bn_p(ks[3], in_planes),
        "bn2": bn_p(ks[4], planes),
        "bn3": bn_p(ks[5], planes),
    }
    if stride != 1 or in_planes != cout:
        params["ws"] = conv_w(ks[6], (cout, in_planes, 1, 1))
    return params


# ----------------------------------- main -------------------------------------


if __name__ == "__main__":
    key = jax.random.PRNGKey(0)
    fwd = jax.jit(bottleneck_forward, static_argnames=("stride", "compute_dtype"))

    N, H, W = 2, 16, 16
    configs = [
        # (in_planes, planes, stride, compute_dtype, tol)
        (4, 4, 2, jnp.float32, 1e-4),    # projection shortcut (stride + channel change)
        (16, 4, 1, jnp.float32, 1e-4),   # identity shortcut
        (16, 4, 1, jnp.bfloat16, 1e-1),  # bf16 MXU inputs, f32 accumulation
    ]
    for in_planes, planes, stride, cdt, tol in configs:
        k_x, k_p, key = jax.random.split(key, 3)
        x = jax.random.normal(k_x, (N, in_planes, H, W), jnp.float32)  # NCHW
        params = make_params(k_p, in_planes, planes, stride)

        out = jax.block_until_ready(fwd(x, params, stride=stride, compute_dtype=cdt))
        ref = jax.block_until_ready(reference_forward(x, params, stride))

        assert out.shape == ref.shape, (out.shape, ref.shape)
        err = float(jnp.max(jnp.abs(out - ref)))
        assert jnp.allclose(out, ref, atol=tol, rtol=tol), (in_planes, stride, str(cdt), err)

    print("KERNEL_OK")
</pallas_src>

<mosaic_0001>
module attributes {stable_mosaic.version = 11 : i64} {
  func.func @_conv1_kernel(%arg0: i32, %arg1: i32, %arg2: memref<1x16x16x128xf32, #tpu.memory_space<vmem>>, %arg3: memref<128x128xf32, #tpu.memory_space<vmem>>, %arg4: memref<1x128xf32, #tpu.memory_space<vmem>>, %arg5: memref<1x128xf32, #tpu.memory_space<vmem>>, %arg6: memref<1x128xf32, #tpu.memory_space<vmem>>, %arg7: memref<1x16x16x128xf32, #tpu.memory_space<vmem>>) attributes {dimension_semantics = [#tpu.dimension_semantics<parallel>, #tpu.dimension_semantics<parallel>], iteration_bounds = array<i64: 2, 1>, scalar_prefetch = 0 : i64, scratch_operands = 0 : i64, tpu.core_type = #tpu.core_type<tc>, window_params = [{transform_indices = @transform_0, window_bounds = array<i64: 1, 16, 16, 128>}, {pipeline_mode = #tpu.pipeline_mode<synchronous>, transform_indices = @transform_1, window_bounds = array<i64: 128, 128>}, {pipeline_mode = #tpu.pipeline_mode<synchronous>, transform_indices = @transform_2, window_bounds = array<i64: 1, 128>}, {pipeline_mode = #tpu.pipeline_mode<synchronous>, transform_indices = @transform_3, window_bounds = array<i64: 1, 128>}, {pipeline_mode = #tpu.pipeline_mode<synchronous>, transform_indices = @transform_4, window_bounds = array<i64: 1, 128>}, {transform_indices = @transform_5, window_bounds = array<i64: 1, 16, 16, 128>}]} {
    %c0 = arith.constant 0 : index
    %c0_0 = arith.constant 0 : index
    %c0_1 = arith.constant 0 : index
    %c0_2 = arith.constant 0 : index
    %0 = vector.load %arg2[%c0, %c0_0, %c0_1, %c0_2] : memref<1x16x16x128xf32, #tpu.memory_space<vmem>>, vector<1x16x16x128xf32>
    %1 = vector.shape_cast %0 : vector<1x16x16x128xf32> to vector<256x128xf32>
    %c0_3 = arith.constant 0 : index
    %c0_4 = arith.constant 0 : index
    %2 = vector.load %arg4[%c0_3, %c0_4] : memref<1x128xf32, #tpu.memory_space<vmem>>, vector<1x128xf32>
    %3 = vector.broadcast %2 : vector<1x128xf32> to vector<256x128xf32>
    %4 = arith.mulf %1, %3 : vector<256x128xf32>
    %c0_5 = arith.constant 0 : index
    %c0_6 = arith.constant 0 : index
    %5 = vector.load %arg5[%c0_5, %c0_6] : memref<1x128xf32, #tpu.memory_space<vmem>>, vector<1x128xf32>
    %6 = vector.broadcast %5 : vector<1x128xf32> to vector<256x128xf32>
    %7 = arith.addf %4, %6 : vector<256x128xf32>
    %cst = arith.constant 0.000000e+00 : f32
    %8 = vector.broadcast %cst : f32 to vector<256x128xf32>
    %9 = arith.maximumf %7, %8 : vector<256x128xf32>
    %c0_7 = arith.constant 0 : index
    %c0_8 = arith.constant 0 : index
    %10 = vector.load %arg3[%c0_7, %c0_8] : memref<128x128xf32, #tpu.memory_space<vmem>>, vector<128x128xf32>
    %cst_9 = arith.constant dense<0.000000e+00> : vector<256x128xf32>
    %11 = tpu.matmul %9, %10, %cst_9 {dimension_numbers = #tpu.dot_dimension_numbers<[1], [0], [0], [1], [0, 0, 1, 1], [], []>} : vector<256x128xf32>, vector<128x128xf32>, vector<256x128xf32> -> vector<256x128xf32>
    %c0_10 = arith.constant 0 : index
    %c0_11 = arith.constant 0 : index
    %12 = vector.load %arg6[%c0_10, %c0_11] : memref<1x128xf32, #tpu.memory_space<vmem>>, vector<1x128xf32>
    %13 = vector.broadcast %12 : vector<1x128xf32> to vector<256x128xf32>
    %14 = arith.addf %11, %13 : vector<256x128xf32>
    %cst_12 = arith.constant 0.000000e+00 : f32
    %15 = vector.broadcast %cst_12 : f32 to vector<256x128xf32>
    %16 = arith.maximumf %14, %15 : vector<256x128xf32>
    %17 = vector.shape_cast %16 : vector<256x128xf32> to vector<1x16x16x128xf32>
    %c0_13 = arith.constant 0 : index
    %c0_14 = arith.constant 0 : index
    %c0_15 = arith.constant 0 : index
    %c0_16 = arith.constant 0 : index
    %18 = vector.load %arg7[%c0_13, %c0_14, %c0_15, %c0_16] : memref<1x16x16x128xf32, #tpu.memory_space<vmem>>, vector<1x16x16x128xf32>
    tpu.vector_store %arg7[%c0_13, %c0_14, %c0_15, %c0_16], %17 {strides = array<i32>} : memref<1x16x16x128xf32, #tpu.memory_space<vmem>>, vector<1x16x16x128xf32>,
    return
  }
  func.func @transform_0(%arg0: i32, %arg1: i32) -> (i32, i32, i32, i32) {
    %c0_i32 = arith.constant 0 : i32
    %c0_i32_0 = arith.constant 0 : i32
    %c0_i32_1 = arith.constant 0 : i32
    return %arg0, %arg1, %c0_i32, %c0_i32_0 : i32, i32, i32, i32
  }
  func.func @transform_1(%arg0: i32, %arg1: i32) -> (i32, i32) {
    %c0_i32 = arith.constant 0 : i32
    %c0_i32_0 = arith.constant 0 : i32
    %c0_i32_1 = arith.constant 0 : i32
    return %c0_i32, %c0_i32_0 : i32, i32
  }
  func.func @transform_2(%arg0: i32, %arg1: i32) -> (i32, i32) {
    %c0_i32 = arith.constant 0 : i32
    %c0_i32_0 = arith.constant 0 : i32
    %c0_i32_1 = arith.constant 0 : i32
    return %c0_i32, %c0_i32_0 : i32, i32
  }
  func.func @transform_3(%arg0: i32, %arg1: i32) -> (i32, i32) {
    %c0_i32 = arith.constant 0 : i32
    %c0_i32_0 = arith.constant 0 : i32
    %c0_i32_1 = arith.constant 0 : i32
    return %c0_i32, %c0_i32_0 : i32, i32
  }
  func.func @transform_4(%arg0: i32, %arg1: i32) -> (i32, i32) {
    %c0_i32 = arith.constant 0 : i32
    %c0_i32_0 = arith.constant 0 : i32
    %c0_i32_1 = arith.constant 0 : i32
    return %c0_i32, %c0_i32_0 : i32, i32
  }
  func.func @transform_5(%arg0: i32, %arg1: i32) -> (i32, i32, i32, i32) {
    %c0_i32 = arith.constant 0 : i32
    %c0_i32_0 = arith.constant 0 : i32
    %c0_i32_1 = arith.constant 0 : i32
    return %arg0, %arg1, %c0_i32, %c0_i32_0 : i32, i32, i32, i32
  }
}

module attributes {stable_mosaic.version = 11 : i64} {
  func.func @_conv23_kernel(%arg0: i32, %arg1: memref<4x9x9x128xf32, #tpu.memory_space<vmem>>, %arg2: memref<9x128x128xf32, #tpu.memory_space<vmem>>, %arg3: memref<1x128xf32, #tpu.memory_space<vmem>>, %arg4: memref<128x128xf32, #tpu.memory_space<vmem>>, %arg5: memref<1x8x8x128xf32, #tpu.memory_space<vmem>>, %arg6: memref<1x128xf32, #tpu.memory_space<vmem>>, %arg7: memref<1x128xf32, #tpu.memory_space<vmem>>, %arg8: memref<128x128xf32, #tpu.memory_space<vmem>>, %arg9: memref<1x8x8x128xf32, #tpu.memory_space<vmem>>) attributes {dimension_semantics = [#tpu.dimension_semantics<parallel>], iteration_bounds = array<i64: 2>, scalar_prefetch = 0 : i64, scratch_operands = 0 : i64, tpu.core_type = #tpu.core_type<tc>, window_params = [{transform_indices = @transform_0, window_bounds = array<i64: 4, 9, 9, 128>}, {pipeline_mode = #tpu.pipeline_mode<synchronous>, transform_indices = @transform_1, window_bounds = array<i64: 9, 128, 128>}, {pipeline_mode = #tpu.pipeline_mode<synchronous>, transform_indices = @transform_2, window_bounds = array<i64: 1, 128>}, {pipeline_mode = #tpu.pipeline_mode<synchronous>, transform_indices = @transform_3, window_bounds = array<i64: 128, 128>}, {transform_indices = @transform_4, window_bounds = array<i64: 1, 8, 8, 128>}, {pipeline_mode = #tpu.pipeline_mode<synchronous>, transform_indices = @transform_5, window_bounds = array<i64: 1, 128>}, {pipeline_mode = #tpu.pipeline_mode<synchronous>, transform_indices = @transform_6, window_bounds = array<i64: 1, 128>}, {pipeline_mode = #tpu.pipeline_mode<synchronous>, transform_indices = @transform_7, window_bounds = array<i64: 128, 128>}, {transform_indices = @transform_8, window_bounds = array<i64: 1, 8, 8, 128>}]} {
    %cst = arith.constant 0.000000e+00 : f32
    %0 = vector.broadcast %cst : f32 to vector<64x128xf32>
    %c0 = arith.constant 0 : index
    %c0_0 = arith.constant 0 : index
    %c0_1 = arith.constant 0 : index
    %c0_2 = arith.constant 0 : index
    %1 = vector.load %arg1[%c0, %c0_0, %c0_1, %c0_2] : memref<4x9x9x128xf32, #tpu.memory_space<vmem>>, vector<1x8x8x128xf32>
    %2 = vector.shape_cast %1 : vector<1x8x8x128xf32> to vector<8x8x128xf32>
    %3 = vector.shape_cast %2 : vector<8x8x128xf32> to vector<64x128xf32>
    %c0_3 = arith.constant 0 : index
    %c0_4 = arith.constant 0 : index
    %c0_5 = arith.constant 0 : index
    %4 = vector.load %arg2[%c0_3, %c0_4, %c0_5] : memref<9x128x128xf32, #tpu.memory_space<vmem>>, vector<1x128x128xf32>
    %5 = vector.shape_cast %4 : vector<1x128x128xf32> to vector<128x128xf32>
    %cst_6 = arith.constant dense<0.000000e+00> : vector<64x128xf32>
    %6 = tpu.matmul %3, %5, %cst_6 {dimension_numbers = #tpu.dot_dimension_numbers<[1], [0], [0], [1], [0, 0, 1, 1], [], []>} : vector<64x128xf32>, vector<128x128xf32>, vector<64x128xf32> -> vector<64x128xf32>
    %7 = arith.addf %0, %6 : vector<64x128xf32>
    %c1 = arith.constant 1 : index
    %c0_7 = arith.constant 0 : index
    %c0_8 = arith.constant 0 : index
    %c0_9 = arith.constant 0 : index
    %8 = vector.load %arg1[%c1, %c0_7, %c0_8, %c0_9] : memref<4x9x9x128xf32, #tpu.memory_space<vmem>>, vector<1x8x8x128xf32>
    %9 = vector.shape_cast %8 : vector<1x8x8x128xf32> to vector<8x8x128xf32>
    %10 = vector.shape_cast %9 : vector<8x8x128xf32> to vector<64x128xf32>
    %c1_10 = arith.constant 1 : index
    %c0_11 = arith.constant 0 : index
    %c0_12 = arith.constant 0 : index
    %11 = vector.load %arg2[%c1_10, %c0_11, %c0_12] : memref<9x128x128xf32, #tpu.memory_space<vmem>>, vector<1x128x128xf32>
    %12 = vector.shape_cast %11 : vector<1x128x128xf32> to vector<128x128xf32>
    %cst_13 = arith.constant dense<0.000000e+00> : vector<64x128xf32>
    %13 = tpu.matmul %10, %12, %cst_13 {dimension_numbers = #tpu.dot_dimension_numbers<[1], [0], [0], [1], [0, 0, 1, 1], [], []>} : vector<64x128xf32>, vector<128x128xf32>, vector<64x128xf32> -> vector<64x128xf32>
    %14 = arith.addf %7, %13 : vector<64x128xf32>
    %c0_14 = arith.constant 0 : index
    %c0_15 = arith.constant 0 : index
    %c1_16 = arith.constant 1 : index
    %c0_17 = arith.constant 0 : index
    %15 = vector.load %arg1[%c0_14, %c0_15, %c1_16, %c0_17] : memref<4x9x9x128xf32, #tpu.memory_space<vmem>>, vector<1x8x8x128xf32>
    %16 = vector.shape_cast %15 : vector<1x8x8x128xf32> to vector<8x8x128xf32>
    %17 = vector.shape_cast %16 : vector<8x8x128xf32> to vector<64x128xf32>
    %c2 = arith.constant 2 : index
    %c0_18 = arith.constant 0 : index
    %c0_19 = arith.constant 0 : index
    %18 = vector.load %arg2[%c2, %c0_18, %c0_19] : memref<9x128x128xf32, #tpu.memory_space<vmem>>, vector<1x128x128xf32>
    %19 = vector.shape_cast %18 : vector<1x128x128xf32> to vector<128x128xf32>
    %cst_20 = arith.constant dense<0.000000e+00> : vector<64x128xf32>
    %20 = tpu.matmul %17, %19, %cst_20 {dimension_numbers = #tpu.dot_dimension_numbers<[1], [0], [0], [1], [0, 0, 1, 1], [], []>} : vector<64x128xf32>, vector<128x128xf32>, vector<64x128xf32> -> vector<64x128xf32>
    %21 = arith.addf %14, %20 : vector<64x128xf32>
    %c2_21 = arith.constant 2 : index
    %c0_22 = arith.constant 0 : index
    %c0_23 = arith.constant 0 : index
    %c0_24 = arith.constant 0 : index
    %22 = vector.load %arg1[%c2_21, %c0_22, %c0_23, %c0_24] : memref<4x9x9x128xf32, #tpu.memory_space<vmem>>, vector<1x8x8x128xf32>
    %23 = vector.shape_cast %22 : vector<1x8x8x128xf32> to vector<8x8x128xf32>
    %24 = vector.shape_cast %23 : vector<8x8x128xf32> to vector<64x128xf32>
    %c3 = arith.constant 3 : index
    %c0_25 = arith.constant 0 : index
    %c0_26 = arith.constant 0 : index
    %25 = vector.load %arg2[%c3, %c0_25, %c0_26] : memref<9x128x128xf32, #tpu.memory_space<vmem>>, vector<1x128x128xf32>
    %26 = vector.shape_cast %25 : vector<1x128x128xf32> to vector<128x128xf32>
    %cst_27 = arith.constant dense<0.000000e+00> : vector<64x128xf32>
    %27 = tpu.matmul %24, %26, %cst_27 {dimension_numbers = #tpu.dot_dimension_numbers<[1], [0], [0], [1], [0, 0, 1, 1], [], []>} : vector<64x128xf32>, vector<128x128xf32>, vector<64x128xf32> -> vector<64x128xf32>
    %28 = arith.addf %21, %27 : vector<64x128xf32>
    %c3_28 = arith.constant 3 : index
    %c0_29 = arith.constant 0 : index
    %c0_30 = arith.constant 0 : index
    %c0_31 = arith.constant 0 : index
    %29 = vector.load %arg1[%c3_28, %c0_29, %c0_30, %c0_31] : memref<4x9x9x128xf32, #tpu.memory_space<vmem>>, vector<1x8x8x128xf32>
    %30 = vector.shape_cast %29 : vector<1x8x8x128xf32> to vector<8x8x128xf32>
    %31 = vector.shape_cast %30 : vector<8x8x128xf32> to vector<64x128xf32>
    %c4 = arith.constant 4 : index
    %c0_32 = arith.constant 0 : index
    %c0_33 = arith.constant 0 : index
    %32 = vector.load %arg2[%c4, %c0_32, %c0_33] : memref<9x128x128xf32, #tpu.memory_space<vmem>>, vector<1x128x128xf32>
    %33 = vector.shape_cast %32 : vector<1x128x128xf32> to vector<128x128xf32>
    %cst_34 = arith.constant dense<0.000000e+00> : vector<64x128xf32>
    %34 = tpu.matmul %31, %33, %cst_34 {dimension_numbers = #tpu.dot_dimension_numbers<[1], [0], [0], [1], [0, 0, 1, 1], [], []>} : vector<64x128xf32>, vector<128x128xf32>, vector<64x128xf32> -> vector<64x128xf32>
    %35 = arith.addf %28, %34 : vector<64x128xf32>
    %c2_35 = arith.constant 2 : index
    %c0_36 = arith.constant 0 : index
    %c1_37 = arith.constant 1 : index
    %c0_38 = arith.constant 0 : index
    %36 = vector.load %arg1[%c2_35, %c0_36, %c1_37, %c0_38] : memref<4x9x9x128xf32, #tpu.memory_space<vmem>>, vector<1x8x8x128xf32>
    %37 = vector.shape_cast %36 : vector<1x8x8x128xf32> to vector<8x8x128xf32>
    %38 = vector.shape_cast %37 : vector<8x8x128xf32> to vector<64x128xf32>
    %c5 = arith.constant 5 : index
    %c0_39 = arith.constant 0 : index
    %c0_40 = arith.constant 0 : index
    %39 = vector.load %arg2[%c5, %c0_39, %c0_40] : memref<9x128x128xf32, #tpu.memory_space<vmem>>, vector<1x128x128xf32>
    %40 = vector.shape_cast %39 : vector<1x128x128xf32> to vector<128x128xf32>
    %cst_41 = arith.constant dense<0.000000e+00> : vector<64x128xf32>
    %41 = tpu.matmul %38, %40, %cst_41 {dimension_numbers = #tpu.dot_dimension_numbers<[1], [0], [0], [1], [0, 0, 1, 1], [], []>} : vector<64x128xf32>, vector<128x128xf32>, vector<64x128xf32> -> vector<64x128xf32>
    %42 = arith.addf %35, %41 : vector<64x128xf32>
    %c0_42 = arith.constant 0 : index
    %c1_43 = arith.constant 1 : index
    %c0_44 = arith.constant 0 : index
    %c0_45 = arith.constant 0 : index
    %43 = vector.load %arg1[%c0_42, %c1_43, %c0_44, %c0_45] : memref<4x9x9x128xf32, #tpu.memory_space<vmem>>, vector<1x8x8x128xf32>
    %44 = vector.shape_cast %43 : vector<1x8x8x128xf32> to vector<8x8x128xf32>
    %45 = vector.shape_cast %44 : vector<8x8x128xf32> to vector<64x128xf32>
    %c6 = arith.constant 6 : index
    %c0_46 = arith.constant 0 : index
    %c0_47 = arith.constant 0 : index
    %46 = vector.load %arg2[%c6, %c0_46, %c0_47] : memref<9x128x128xf32, #tpu.memory_space<vmem>>, vector<1x128x128xf32>
    %47 = vector.shape_cast %46 : vector<1x128x128xf32> to vector<128x128xf32>
    %cst_48 = arith.constant dense<0.000000e+00> : vector<64x128xf32>
    %48 = tpu.matmul %45, %47, %cst_48 {dimension_numbers = #tpu.dot_dimension_numbers<[1], [0], [0], [1], [0, 0, 1, 1], [], []>} : vector<64x128xf32>, vector<128x128xf32>, vector<64x128xf32> -> vector<64x128xf32>
    %49 = arith.addf %42, %48 : vector<64x128xf32>
    %c1_49 = arith.constant 1 : index
    %c1_50 = arith.constant 1 : index
    %c0_51 = arith.constant 0 : index
    %c0_52 = arith.constant 0 : index
    %50 = vector.load %arg1[%c1_49, %c1_50, %c0_51, %c0_52] : memref<4x9x9x128xf32, #tpu.memory_space<vmem>>, vector<1x8x8x128xf32>
    %51 = vector.shape_cast %50 : vector<1x8x8x128xf32> to vector<8x8x128xf32>
    %52 = vector.shape_cast %51 : vector<8x8x128xf32> to vector<64x128xf32>
    %c7 = arith.constant 7 : index
    %c0_53 = arith.constant 0 : index
    %c0_54 = arith.constant 0 : index
    %53 = vector.load %arg2[%c7, %c0_53, %c0_54] : memref<9x128x128xf32, #tpu.memory_space<vmem>>, vector<1x128x128xf32>
    %54 = vector.shape_cast %53 : vector<1x128x128xf32> to vector<128x128xf32>
    %cst_55 = arith.constant dense<0.000000e+00> : vector<64x128xf32>
    %55 = tpu.matmul %52, %54, %cst_55 {dimension_numbers = #tpu.dot_dimension_numbers<[1], [0], [0], [1], [0, 0, 1, 1], [], []>} : vector<64x128xf32>, vector<128x128xf32>, vector<64x128xf32> -> vector<64x128xf32>
    %56 = arith.addf %49, %55 : vector<64x128xf32>
    %c0_56 = arith.constant 0 : index
    %c1_57 = arith.constant 1 : index
    %c1_58 = arith.constant 1 : index
    %c0_59 = arith.constant 0 : index
    %57 = vector.load %arg1[%c0_56, %c1_57, %c1_58, %c0_59] : memref<4x9x9x128xf32, #tpu.memory_space<vmem>>, vector<1x8x8x128xf32>
    %58 = vector.shape_cast %57 : vector<1x8x8x128xf32> to vector<8x8x128xf32>
    %59 = vector.shape_cast %58 : vector<8x8x128xf32> to vector<64x128xf32>
    %c8 = arith.constant 8 : index
    %c0_60 = arith.constant 0 : index
    %c0_61 = arith.constant 0 : index
    %60 = vector.load %arg2[%c8, %c0_60, %c0_61] : memref<9x128x128xf32, #tpu.memory_space<vmem>>, vector<1x128x128xf32>
    %61 = vector.shape_cast %60 : vector<1x128x128xf32> to vector<128x128xf32>
    %cst_62 = arith.constant dense<0.000000e+00> : vector<64x128xf32>
    %62 = tpu.matmul %59, %61, %cst_62 {dimension_numbers = #tpu.dot_dimension_numbers<[1], [0], [0], [1], [0, 0, 1, 1], [], []>} : vector<64x128xf32>, vector<128x128xf32>, vector<64x128xf32> -> vector<64x128xf32>
    %63 = arith.addf %56, %62 : vector<64x128xf32>
    %c0_63 = arith.constant 0 : index
    %c0_64 = arith.constant 0 : index
    %64 = vector.load %arg3[%c0_63, %c0_64] : memref<1x128xf32, #tpu.memory_space<vmem>>, vector<1x128xf32>
    %65 = vector.broadcast %64 : vector<1x128xf32> to vector<64x128xf32>
    %66 = arith.addf %63, %65 : vector<64x128xf32>
    %cst_65 = arith.constant 0.000000e+00 : f32
    %67 = vector.broadcast %cst_65 : f32 to vector<64x128xf32>
    %68 = arith.maximumf %66, %67 : vector<64x128xf32>
    %c0_66 = arith.constant 0 : index
    %c0_67 = arith.constant 0 : index
    %69 = vector.load %arg4[%c0_66, %c0_67] : memref<128x128xf32, #tpu.memory_space<vmem>>, vector<128x128xf32>
    %cst_68 = arith.constant dense<0.000000e+00> : vector<64x128xf32>
    %70 = tpu.matmul %68, %69, %cst_68 {dimension_numbers = #tpu.dot_dimension_numbers<[1], [0], [0], [1], [0, 0, 1, 1], [], []>} : vector<64x128xf32>, vector<128x128xf32>, vector<64x128xf32> -> vector<64x128xf32>
    %c0_69 = arith.constant 0 : index
    %c0_70 = arith.constant 0 : index
    %c0_71 = arith.constant 0 : index
    %c0_72 = arith.constant 0 : index
    %71 = vector.load %arg5[%c0_69, %c0_70, %c0_71, %c0_72] : memref<1x8x8x128xf32, #tpu.memory_space<vmem>>, vector<1x8x8x128xf32>
    %72 = vector.shape_cast %71 : vector<1x8x8x128xf32> to vector<64x128xf32>
    %c0_73 = arith.constant 0 : index
    %c0_74 = arith.constant 0 : index
    %73 = vector.load %arg6[%c0_73, %c0_74] : memref<1x128xf32, #tpu.memory_space<vmem>>, vector<1x128xf32>
    %74 = vector.broadcast %73 : vector<1x128xf32> to vector<64x128xf32>
    %75 = arith.mulf %72, %74 : vector<64x128xf32>
    %c0_75 = arith.constant 0 : index
    %c0_76 = arith.constant 0 : index
    %76 = vector.load %arg7[%c0_75, %c0_76] : memref<1x128xf32, #tpu.memory_space<vmem>>, vector<1x128xf32>
    %77 = vector.broadcast %76 : vector<1x128xf32> to vector<64x128xf32>
    %78 = arith.addf %75, %77 : vector<64x128xf32>
    %cst_77 = arith.constant 0.000000e+00 : f32
    %79 = vector.broadcast %cst_77 : f32 to vector<64x128xf32>
    %80 = arith.maximumf %78, %79 : vector<64x128xf32>
    %c0_78 = arith.constant 0 : index
    %c0_79 = arith.constant 0 : index
    %81 = vector.load %arg8[%c0_78, %c0_79] : memref<128x128xf32, #tpu.memory_space<vmem>>, vector<128x128xf32>
    %cst_80 = arith.constant dense<0.000000e+00> : vector<64x128xf32>
    %82 = tpu.matmul %80, %81, %cst_80 {dimension_numbers = #tpu.dot_dimension_numbers<[1], [0], [0], [1], [0, 0, 1, 1], [], []>} : vector<64x128xf32>, vector<128x128xf32>, vector<64x128xf32> -> vector<64x128xf32>
    %83 = arith.addf %70, %82 : vector<64x128xf32>
    %84 = vector.shape_cast %83 : vector<64x128xf32> to vector<1x8x8x128xf32>
    %c0_81 = arith.constant 0 : index
    %c0_82 = arith.constant 0 : index
    %c0_83 = arith.constant 0 : index
    %c0_84 = arith.constant 0 : index
    %85 = vector.load %arg9[%c0_81, %c0_82, %c0_83, %c0_84] : memref<1x8x8x128xf32, #tpu.memory_space<vmem>>, vector<1x8x8x128xf32>
    tpu.vector_store %arg9[%c0_81, %c0_82, %c0_83, %c0_84], %84 {strides = array<i32>} : memref<1x8x8x128xf32, #tpu.memory_space<vmem>>, vector<1x8x8x128xf32>,
    return
  }
  func.func @transform_0(%arg0: i32) -> (i32, i32, i32, i32) {
    %c0_i32 = arith.constant 0 : i32
    %c0_i32_0 = arith.constant 0 : i32
    %c0_i32_1 = arith.constant 0 : i32
    %c0_i32_2 = arith.constant 0 : i32
    return %arg0, %c0_i32, %c0_i32_0, %c0_i32_1 : i32, i32, i32, i32
  }
  func.func @transform_1(%arg0: i32) -> (i32, i32, i32) {
    %c0_i32 = arith.constant 0 : i32
    %c0_i32_0 = arith.constant 0 : i32
    %c0_i32_1 = arith.constant 0 : i32
    %c0_i32_2 = arith.constant 0 : i32
    return %c0_i32, %c0_i32_0, %c0_i32_1 : i32, i32, i32
  }
  func.func @transform_2(%arg0: i32) -> (i32, i32) {
    %c0_i32 = arith.constant 0 : i32
    %c0_i32_0 = arith.constant 0 : i32
    %c0_i32_1 = arith.constant 0 : i32
    return %c0_i32, %c0_i32_0 : i32, i32
  }
  func.func @transform_3(%arg0: i32) -> (i32, i32) {
    %c0_i32 = arith.constant 0 : i32
    %c0_i32_0 = arith.constant 0 : i32
    %c0_i32_1 = arith.constant 0 : i32
    return %c0_i32, %c0_i32_0 : i32, i32
  }
  func.func @transform_4(%arg0: i32) -> (i32, i32, i32, i32) {
    %c0_i32 = arith.constant 0 : i32
    %c0_i32_0 = arith.constant 0 : i32
    %c0_i32_1 = arith.constant 0 : i32
    %c0_i32_2 = arith.constant 0 : i32
    return %arg0, %c0_i32, %c0_i32_0, %c0_i32_1 : i32, i32, i32, i32
  }
  func.func @transform_5(%arg0: i32) -> (i32, i32) {
    %c0_i32 = arith.constant 0 : i32
    %c0_i32_0 = arith.constant 0 : i32
    %c0_i32_1 = arith.constant 0 : i32
    return %c0_i32, %c0_i32_0 : i32, i32
  }
  func.func @transform_6(%arg0: i32) -> (i32, i32) {
    %c0_i32 = arith.constant 0 : i32
    %c0_i32_0 = arith.constant 0 : i32
    %c0_i32_1 = arith.constant 0 : i32
    return %c0_i32, %c0_i32_0 : i32, i32
  }
  func.func @transform_7(%arg0: i32) -> (i32, i32) {
    %c0_i32 = arith.constant 0 : i32
    %c0_i32_0 = arith.constant 0 : i32
    %c0_i32_1 = arith.constant 0 : i32
    return %c0_i32, %c0_i32_0 : i32, i32
  }
  func.func @transform_8(%arg0: i32) -> (i32, i32, i32, i32) {
    %c0_i32 = arith.constant 0 : i32
    %c0_i32_0 = arith.constant 0 : i32
    %c0_i32_1 = arith.constant 0 : i32
    %c0_i32_2 = arith.constant 0 : i32
    return %arg0, %c0_i32, %c0_i32_0, %c0_i32_1 : i32, i32, i32, i32
  }
}

</mosaic_0001>

<bundles_post_ra>
// kernel: bottleneck_forward.2
= control target key start
LH: loop header
LB: loop body
LE: loop exit
PB: predicated region body
PF: predicated region fallthrough
CT: control target
= control target key end

     0   :  { %s1089_s18 = smov 0   ;;  %s1091_s19 = smov 0   ;;  %s1356_s0 = inlined_call_operand.vmem [shape: f32[2,16,16,128], index: 0, kind: input, shape index: {}]   ;;  %s1357_s1 = inlined_call_operand.vmem [shape: f32[128,128], index: 1, kind: input, shape index: {}]   ;;  %s1358_s2 = inlined_call_operand.vmem [shape: f32[1,128], index: 2, kind: input, shape index: {}]   ;;  %s1359_s3 = inlined_call_operand.vmem [shape: f32[1,128], index: 3, kind: input, shape index: {}]   ;;  %s1360_s4 = inlined_call_operand.vmem [shape: f32[1,128], index: 4, kind: input, shape index: {}]   ;;  %s1361_s5 = inlined_call_operand.vmem [shape: f32[2,16,16,128], index: 5, kind: output, shape index: {}]  }
   0x1   :  { %s1093_s20 = smov 0  }
   0x2 LB: > { %s27_s21 = sadd.s32 1, %s1053_s19  ;;  %p823_p0 = scmp.ge.s32.totalorder %s1057_s20, 1  ;;  %s1057_s20 = sphi %s1093_s20, %s15_s20   ;;  %s1053_s19 = sphi %s1091_s19, %s1363_s19   ;;  %s1049_s18 = sphi %s1089_s18, %s1362_s18  }
   0x3   : > { %p29_p1 = scmp.ge.s32.totalorder %s27_s21, 2  ;;  %p209_p2 = scmp.lt.s32.totalorder %s1057_s20, 3 }
   0x5   : > { %s1365_s21 = smov (%p29_p1, %s27_s21), 0  ;;  %p210_p3 = pnand %p823_p0, %p209_p2 }
   0x6   : > { %v411_v0 = vld [vmem:[%s1357_s1] sm:$0xff] (!%p210_p3)  ;;  %v412_v1 = vld [vmem:[%s1357_s1 + $0x8] sm:$0xff] (!%p210_p3)  ;;  %v413_v2 = vld [vmem:[%s1357_s1 + $0x10] sm:$0xff] (!%p210_p3)  ;;  %p248_p4 = scmp.lt.s32.totalorder (!%p210_p3), %s1049_s18, 1 }
   0x7   : > { %213 = sbr.rel (%p210_p3) target bundleno = 287 (0x11f), region = 40  ;;  %v963_v3 = vpack.c.bf16 (!%p210_p3), %v412_v1, %v411_v0  ;;  %v414_v4 = vld [vmem:[%s1357_s1 + $0x18] sm:$0xff] (!%p210_p3)  ;;  %v415_v6 = vld [vmem:[%s1357_s1 + $0x20] sm:$0xff] (!%p210_p3)  ;;  %v416_v7 = vld [vmem:[%s1357_s1 + $0x28] sm:$0xff] (!%p210_p3) }
   0x8   : > { %v967_v5 = vpack.c.bf16 (!%p210_p3), %v414_v4, %v413_v2  ;;  %v971_v8 = vpack.c.bf16 (!%p210_p3), %v416_v7, %v415_v6  ;;  %v417_v9 = vld [vmem:[%s1357_s1 + $0x30] sm:$0xff] (!%p210_p3)  ;;  %v418_v10 = vld [vmem:[%s1357_s1 + $0x38] sm:$0xff] (!%p210_p3)  ;;  %v1144_v11 = vld [vmem:[%s1358_s2] ss:$0 sm:$0xff] (!%p210_p3) }
   0x9   : > { %964 = vmatprep.subr.bf16.mxu0 (!%p210_p3), %v963_v3  ;;  %995 = vmatprep.subr.bf16.mxu1 (!%p210_p3), %v963_v3  ;;  %v1150_v13 = vld [vmem:[%s1359_s3] ss:$0 sm:$0xff] (!%p210_p3)  ;;  %v975_v17 = vpack.c.bf16 (!%p210_p3), %v418_v10, %v417_v9  ;;  %v420_v21 = vld [vmem:[%s1357_s1 + $0x48] sm:$0xff] (!%p210_p3)  ;;  %v421_v25 = vld [vmem:[%s1357_s1 + $0x50] sm:$0xff] (!%p210_p3) }
   0xa   : > { %966 = vmatpush3.bf16.msra.mxu0 (!%p210_p3), %v963_v3  ;;  %1003 = vmatpush3.bf16.msra.mxu1 (!%p210_p3), %v963_v3  ;;  %v419_v20 = vld [vmem:[%s1357_s1 + $0x40] sm:$0xff] (!%p210_p3)  ;;  %v422_v26 = vld [vmem:[%s1357_s1 + $0x58] sm:$0xff] (!%p210_p3)  ;;  %v424_v29 = vld [vmem:[%s1357_s1 + $0x68] sm:$0xff] (!%p210_p3) }
   0xb   : > { %968 = vmatprep.subr.bf16.mxu0 (!%p210_p3), %v967_v5  ;;  %996 = vmatprep.subr.bf16.mxu1 (!%p210_p3), %v967_v5  ;;  %v979_v24 = vpack.c.bf16 (!%p210_p3), %v420_v21, %v419_v20  ;;  %v983_v27 = vpack.c.bf16 (!%p210_p3), %v422_v26, %v421_v25  ;;  %v423_v28 = vld [vmem:[%s1357_s1 + $0x60] sm:$0xff] (!%p210_p3)  ;;  %v425_v35 = vld [vmem:[%s1357_s1 + $0x70] sm:$0xff] (!%p210_p3)  ;;  %v426_v36 = vld [vmem:[%s1357_s1 + $0x78] sm:$0xff] (!%p210_p3) }
   0xc   : > { %v987_v32 = vpack.c.bf16 (!%p210_p3), %v424_v29, %v423_v28  ;;  %v991_v44 = vpack.c.bf16 (!%p210_p3), %v426_v36, %v425_v35 }
   0xe   : > { %s1367_s18 = smov (!%p248_p4, %s1049_s18), 1  ;;  %970 = vmatpush3.bf16.msra.mxu0 %v967_v5  ;;  %1004 = vmatpush3.bf16.msra.mxu1 %v967_v5 }
   0xf   : > { %s833_s9 = sshll.u32 %s1367_s18, 8  ;;  %972 = vmatprep.subr.bf16.mxu0 %v971_v8  ;;  %997 = vmatprep.subr.bf16.mxu1 %v971_v8 }
  0x10   : > { %s1139_s16 = scalar_lea.vmem %s1356_s0, %s833_s9  ;;  %s1283_s25 = scalar_lea.vmem %s1361_s5, %s833_s9 }
  0x11   : > { %v269_v12 = vld [vmem:[%s1139_s16] sm:$0xff]  ;;  %v270_v30 = vld [vmem:[%s1139_s16 + $0x8] sm:$0xff]  ;;  %v271_v33 = vld [vmem:[%s1139_s16 + $0x10] sm:$0xff] }
  0x12   : > { %v285_v14 = vld [vmem:[%s1139_s16 + $0x80] sm:$0xff]  ;;  %v308_v15 = vmul.f32 %v1144_v11, %v269_v12  ;;  %974 = vmatpush3.bf16.msra.mxu0 %v971_v8  ;;  %1005 = vmatpush3.bf16.msra.mxu1 %v971_v8  ;;  %v286_v31 = vld [vmem:[%s1139_s16 + $0x88] sm:$0xff]  ;;  %v287_v34 = vld [vmem:[%s1139_s16 + $0x90] sm:$0xff]  ;;  %v309_v37 = vmul.f32 %v1144_v11, %v270_v30  ;;  %v310_v41 = vmul.f32 %v1144_v11, %v271_v33 }
  0x13   : > { %v324_v16 = vmul.f32 %v1144_v11, %v285_v14  ;;  %976 = vmatprep.subr.bf16.mxu0 %v975_v17  ;;  %998 = vmatprep.subr.bf16.mxu1 %v975_v17  ;;  %v325_v38 = vmul.f32 %v1144_v11, %v286_v31  ;;  %v272_v39 = vld [vmem:[%s1139_s16 + $0x18] sm:$0xff]  ;;  %v326_v42 = vmul.f32 %v1144_v11, %v287_v34  ;;  %v273_v43 = vld [vmem:[%s1139_s16 + $0x20] sm:$0xff]  ;;  %v274_v51 = vld [vmem:[%s1139_s16 + $0x28] sm:$0xff] }
  0x14   : > { %v347_v18 = vadd.f32 %v1150_v13, %v308_v15  ;;  %v288_v40 = vld [vmem:[%s1139_s16 + $0x98] sm:$0xff]  ;;  %v289_v45 = vld [vmem:[%s1139_s16 + $0xa0] sm:$0xff]  ;;  %v348_v46 = vadd.f32 %v1150_v13, %v309_v37  ;;  %v311_v47 = vmul.f32 %v1144_v11, %v272_v39  ;;  %v312_v50 = vmul.f32 %v1144_v11, %v273_v43  ;;  %v290_v55 = vld [vmem:[%s1139_s16 + $0xa8] sm:$0xff] }
  0x15   : > { %v363_v19 = vadd.f32 %v1150_v13, %v324_v16  ;;  %v327_v48 = vmul.f32 %v1144_v11, %v288_v40  ;;  %v364_v49 = vadd.f32 %v1150_v13, %v325_v38  ;;  %v349_v52 = vadd.f32 %v1150_v13, %v310_v41  ;;  %v275_v56 = vld [vmem:[%s1139_s16 + $0x30] sm:$0xff]  ;;  %v276_v2 = vld [vmem:[%s1139_s16 + $0x38] sm:$0xff]  ;;  %v277_v8 = vld [vmem:[%s1139_s16 + $0x40] sm:$0xff] }
  0x16   : > { %v379_v22 = vmax.f32 %v347_v18, 0.0  ;;  %978 = vmatpush3.bf16.msra.mxu0 %v975_v17  ;;  %1006 = vmatpush3.bf16.msra.mxu1 %v975_v17  ;;  %v365_v53 = vadd.f32 %v1150_v13, %v326_v42  ;;  %v328_v54 = vmul.f32 %v1144_v11, %v289_v45  ;;  %v291_v57 = vld [vmem:[%s1139_s16 + $0xb0] sm:$0xff]  ;;  %v380_v58 = vmax.f32 %v348_v46, 0.0  ;;  %v292_v7 = vld [vmem:[%s1139_s16 + $0xb8] sm:$0xff]  ;;  %v293_v9 = vld [vmem:[%s1139_s16 + $0xc0] sm:$0xff] }
  0x17   : > { %v395_v23 = vmax.f32 %v363_v19, 0.0  ;;  %980 = vmatprep.subr.bf16.mxu0 %v979_v24  ;;  %999 = vmatprep.subr.bf16.mxu1 %v979_v24  ;;  %v350_v59 = vadd.f32 %v1150_v13, %v311_v47  ;;  %v366_v60 = vadd.f32 %v1150_v13, %v327_v48  ;;  %v313_v61 = vmul.f32 %v1144_v11, %v274_v51  ;;  %v278_v20 = vld [vmem:[%s1139_s16 + $0x48] sm:$0xff]  ;;  %v279_v26 = vld [vmem:[%s1139_s16 + $0x50] sm:$0xff]  ;;  %v280_v36 = vld [vmem:[%s1139_s16 + $0x58] sm:$0xff] }
  0x18   : > { %915 = vmatprep.mubr.f32.mxu0 %v379_v22  ;;  %v396_v62 = vmax.f32 %v364_v49, 0.0  ;;  %v351_v63 = vadd.f32 %v1150_v13, %v312_v50  ;;  %v329_v0 = vmul.f32 %v1144_v11, %v290_v55  ;;  %v314_v1 = vmul.f32 %v1144_v11, %v275_v56  ;;  %v294_v21 = vld [vmem:[%s1139_s16 + $0xc8] sm:$0xff]  ;;  %v296_v41 = vld [vmem:[%s1139_s16 + $0xd8] sm:$0xff]  ;;  %v281_v42 = vld [vmem:[%s1139_s16 + $0x60] sm:$0xff] }
  0x19   : > { %939 = vmatprep.mubr.f32.mxu1 %v395_v23  ;;  %v381_v3 = vmax.f32 %v349_v52, 0.0  ;;  %v397_v4 = vmax.f32 %v365_v53, 0.0  ;;  %v367_v5 = vadd.f32 %v1150_v13, %v328_v54  ;;  %v330_v6 = vmul.f32 %v1144_v11, %v291_v57  ;;  %v297_v43 = vld [vmem:[%s1139_s16 + $0xe0] sm:$0xff]  ;;  %v282_v52 = vld [vmem:[%s1139_s16 + $0x68] sm:$0xff] }
  0x1a   : > { %982 = vmatpush3.bf16.msra.mxu0 %v979_v24  ;;  %1007 = vmatpush3.bf16.msra.mxu1 %v979_v24  ;;  %v382_v10 = vmax.f32 %v350_v59, 0.0  ;;  %v398_v12 = vmax.f32 %v366_v60, 0.0  ;;  %v352_v14 = vadd.f32 %v1150_v13, %v313_v61  ;;  %v315_v15 = vmul.f32 %v1144_v11, %v276_v2  ;;  %v298_v57 = vld [vmem:[%s1139_s16 + $0xe8] sm:$0xff]  ;;  %v299_v59 = vld [vmem:[%s1139_s16 + $0xf0] sm:$0xff] }
  0x1b   : > { %984 = vmatprep.subr.bf16.mxu0 %v983_v27  ;;  %1000 = vmatprep.subr.bf16.mxu1 %v983_v27  ;;  %v383_v16 = vmax.f32 %v351_v63, 0.0  ;;  %v368_v17 = vadd.f32 %v1150_v13, %v329_v0  ;;  %v353_v18 = vadd.f32 %v1150_v13, %v314_v1  ;;  %v331_v19 = vmul.f32 %v1144_v11, %v292_v7 }
  0x1c   : > { %v399_v22 = vmax.f32 %v367_v5, 0.0  ;;  %v369_v23 = vadd.f32 %v1150_v13, %v330_v6  ;;  %v316_v24 = vmul.f32 %v1144_v11, %v277_v8  ;;  %v332_v25 = vmul.f32 %v1144_v11, %v293_v9  ;;  %v284_v8 = vld [vmem:[%s1139_s16 + $0x78] sm:$0xff] }
  0x1d   : > { %v384_v28 = vmax.f32 %v352_v14, 0.0  ;;  %v354_v29 = vadd.f32 %v1150_v13, %v315_v15  ;;  %v317_v30 = vmul.f32 %v1144_v11, %v278_v20  ;;  %v333_v31 = vmul.f32 %v1144_v11, %v294_v21  ;;  %v300_v9 = vld [vmem:[%s1139_s16 + $0xf8] sm:$0xff] }
  0x1e   : > { %986 = vmatpush3.bf16.msra.mxu0 %v983_v27  ;;  %1008 = vmatpush3.bf16.msra.mxu1 %v983_v27  ;;  %v295_v27 = vld [vmem:[%s1139_s16 + $0xd0] sm:$0xff]  ;;  %v385_v33 = vmax.f32 %v353_v18, 0.0  ;;  %v370_v34 = vadd.f32 %v1150_v13, %v331_v19  ;;  %v318_v35 = vmul.f32 %v1144_v11, %v279_v26  ;;  %v401_v37 = vmax.f32 %v369_v23, 0.0 }
  0x1f   : > { %988 = vmatprep.subr.bf16.mxu0 %v987_v32  ;;  %1001 = vmatprep.subr.bf16.mxu1 %v987_v32  ;;  %v355_v38 = vadd.f32 %v1150_v13, %v316_v24  ;;  %v371_v39 = vadd.f32 %v1150_v13, %v332_v25  ;;  %v334_v40 = vmul.f32 %v1144_v11, %v295_v27 }
  0x20   : > { %v356_v45 = vadd.f32 %v1150_v13, %v317_v30  ;;  %v372_v46 = vadd.f32 %v1150_v13, %v333_v31  ;;  %v319_v47 = vmul.f32 %v1144_v11, %v280_v36  ;;  %v402_v48 = vmax.f32 %v370_v34, 0.0 }
  0x21   : > { %v357_v49 = vadd.f32 %v1150_v13, %v318_v35  ;;  %v335_v50 = vmul.f32 %v1144_v11, %v296_v41  ;;  %v320_v51 = vmul.f32 %v1144_v11, %v281_v42  ;;  %v387_v53 = vmax.f32 %v355_v38, 0.0 }
  0x22   : > { %990 = vmatpush3.bf16.msra.mxu0 %v987_v32  ;;  %1009 = vmatpush3.bf16.msra.mxu1 %v987_v32  ;;  %v400_v32 = vmax.f32 %v368_v17, 0.0  ;;  %v403_v54 = vmax.f32 %v371_v39, 0.0  ;;  %v373_v55 = vadd.f32 %v1150_v13, %v334_v40  ;;  %v336_v56 = vmul.f32 %v1144_v11, %v297_v43 }
  0x23   : > { %992 = vmatprep.subr.bf16.mxu0 %v991_v44  ;;  %1002 = vmatprep.subr.bf16.mxu1 %v991_v44  ;;  %v388_v60 = vmax.f32 %v356_v45, 0.0  ;;  %v404_v61 = vmax.f32 %v372_v46, 0.0  ;;  %v321_v63 = vmul.f32 %v1144_v11, %v282_v52  ;;  %v389_v0 = vmax.f32 %v357_v49, 0.0 }
  0x24   : > { %v374_v1 = vadd.f32 %v1150_v13, %v335_v50  ;;  %v359_v2 = vadd.f32 %v1150_v13, %v320_v51  ;;  %v375_v5 = vadd.f32 %v1150_v13, %v336_v56  ;;  %v338_v7 = vmul.f32 %v1144_v11, %v299_v59 }
  0x25   : > { %v339_v17 = vmul.f32 %v1144_v11, %v300_v9 }
  0x26   : > { %994 = vmatpush3.bf16.msra.mxu0 %v991_v44  ;;  %1010 = vmatpush3.bf16.msra.mxu1 %v991_v44  ;;  %v386_v44 = vmax.f32 %v354_v29, 0.0  ;;  %v406_v14 = vmax.f32 %v374_v1, 0.0  ;;  %v391_v18 = vmax.f32 %v359_v2, 0.0  ;;  %v407_v19 = vmax.f32 %v375_v5, 0.0  ;;  %v1274_v29 = vld [vmem:[%s1360_s4] ss:$0 sm:$0xff] }
  0x27   : > { %v377_v21 = vadd.f32 %v1150_v13, %v338_v7  ;;  %v378_v25 = vadd.f32 %v1150_v13, %v339_v17 }
  0x29   : > { %916 = vmatmul.mubr.f32.vlgmr.msra.gmra.mrb[0].mxu0 %v380_v58  ;;  %940 = vmatmul.mubr.f32.vlgmr.msra.gmra.mrb[0].mxu1 %v396_v62  ;;  %v283_v58 = vld [vmem:[%s1139_s16 + $0x70] sm:$0xff]  ;;  %v358_v62 = vadd.f32 %v1150_v13, %v319_v47 }
  0x2a   : > { %918 = vmatprep.mubr.f32.mxu0 %v381_v3  ;;  %942 = vmatprep.mubr.f32.mxu1 %v397_v4  ;;  %v337_v3 = vmul.f32 %v1144_v11, %v298_v57  ;;  %v405_v4 = vmax.f32 %v373_v55, 0.0  ;;  %v322_v6 = vmul.f32 %v1144_v11, %v283_v58 }
  0x2c   : > { %v376_v15 = vadd.f32 %v1150_v13, %v337_v3  ;;  %v361_v20 = vadd.f32 %v1150_v13, %v322_v6 }
  0x2d   : > { %919 = vmatmul.mubr.f32.gmra.mrb[2].mxu0 %v382_v10  ;;  %943 = vmatmul.mubr.f32.gmra.mrb[2].mxu1 %v398_v12  ;;  %v390_v10 = vmax.f32 %v358_v62, 0.0  ;;  %v360_v12 = vadd.f32 %v1150_v13, %v321_v63 }
  0x2e   : > { %921 = vmatprep.mubr.f32.mxu0 %v383_v16  ;;  %945 = vmatprep.mubr.f32.mxu1 %v399_v22  ;;  %v323_v16 = vmul.f32 %v1144_v11, %v284_v8  ;;  %v408_v23 = vmax.f32 %v376_v15, 0.0  ;;  %v393_v26 = vmax.f32 %v361_v20, 0.0  ;;  %v409_v11 = vmax.f32 %v377_v21, 0.0 }
  0x2f   : > { %v392_v22 = vmax.f32 %v360_v12, 0.0 }
  0x30   : > { %v362_v24 = vadd.f32 %v1150_v13, %v323_v16 }
  0x31   : > { %922 = vmatmul.mubr.f32.gmra.mrb[4].mxu0 %v384_v28  ;;  %946 = vmatmul.mubr.f32.gmra.mrb[4].mxu1 %v400_v32  ;;  %v410_v28 = vmax.f32 %v378_v25, 0.0 }
  0x32   : > { %924 = vmatprep.mubr.f32.mxu0 %v385_v33  ;;  %948 = vmatprep.mubr.f32.mxu1 %v401_v37  ;;  %v394_v27 = vmax.f32 %v362_v24, 0.0 }
  0x35   : > { %925 = vmatmul.mubr.f32.gmra.mrb[6].mxu0 %v386_v44  ;;  %949 = vmatmul.mubr.f32.gmra.mrb[6].mxu1 %v402_v48 }
  0x36   : > { %927 = vmatprep.mubr.f32.mxu0 %v387_v53  ;;  %951 = vmatprep.mubr.f32.mxu1 %v403_v54 }
  0x39   : > { %928 = vmatmul.mubr.f32.gmra.mrb[8].mxu0 %v388_v60  ;;  %952 = vmatmul.mubr.f32.gmra.mrb[8].mxu1 %v404_v61 }
  0x3a   : > { %930 = vmatprep.mubr.f32.mxu0 %v389_v0  ;;  %954 = vmatprep.mubr.f32.mxu1 %v405_v4 }
  0x3d   : > { %931 = vmatmul.mubr.f32.gmra.mrb[10].mxu0 %v390_v10  ;;  %955 = vmatmul.mubr.f32.gmra.mrb[10].mxu1 %v406_v14 }
  0x3e   : > { %933 = vmatprep.mubr.f32.mxu0 %v391_v18  ;;  %957 = vmatprep.mubr.f32.mxu1 %v407_v19 }
  0x41   : > { %934 = vmatmul.mubr.f32.gmra.mrb[12].mxu0 %v392_v22  ;;  %958 = vmatmul.mubr.f32.gmra.mrb[12].mxu1 %v408_v23 }
  0x42   : > { %936 = vmatprep.mubr.f32.mxu0 %v393_v26  ;;  %960 = vmatprep.mubr.f32.mxu1 %v409_v11 }
  0x45   : > { %937 = vmatmul.mubr.f32.gmra.mrb[14].mxu0 %v394_v27  ;;  %961 = vmatmul.mubr.f32.gmra.mrb[14].mxu1 %v410_v28 }
  0xfc   : > { %v917_v30 = vpop.f32.mrb[0].mxu0  ;;  %v941_v13 = vpop.f32.mrb[0].mxu1 }
  0xfd   : > { %v506_v31 = vadd.f32 %v917_v30, %v1274_v29  ;;  %v586_v32 = vadd.f32 %v941_v13, %v1274_v29  ;;  %v500_v33 = vpop.f32.mrb[1].mxu0  ;;  %v580_v34 = vpop.f32.mrb[1].mxu1 }
  0xfe   : > { %v501_v35 = vadd.f32 %v1274_v29, %v500_v33  ;;  %v581_v36 = vadd.f32 %v1274_v29, %v580_v34 }
  0xff   : > { %v660_v37 = vmax.f32 %v506_v31, 0.0  ;;  %v676_v38 = vmax.f32 %v586_v32, 0.0 }
 0x100   : > { %v659_v39 = vmax.f32 %v501_v35, 0.0  ;;  %v675_v40 = vmax.f32 %v581_v36, 0.0  ;;  %v920_v41 = vpop.f32.mrb[2].mxu0  ;;  %v944_v42 = vpop.f32.mrb[2].mxu1 }
 0x101   : > { %692 = vst [vmem:[%s1283_s25 + $0x8] sm:$0xff] %v660_v37  ;;  %708 = vst [vmem:[%s1283_s25 + $0x88] sm:$0xff] %v676_v38  ;;  %v516_v43 = vadd.f32 %v920_v41, %v1274_v29  ;;  %v596_v44 = vadd.f32 %v944_v42, %v1274_v29  ;;  %v510_v45 = vpop.f32.mrb[3].mxu0  ;;  %v590_v46 = vpop.f32.mrb[3].mxu1 }
 0x102   : > { %691 = vst [vmem:[%s1283_s25] sm:$0xff] %v659_v39  ;;  %707 = vst [vmem:[%s1283_s25 + $0x80] sm:$0xff] %v675_v40  ;;  %v511_v47 = vadd.f32 %v1274_v29, %v510_v45  ;;  %v591_v48 = vadd.f32 %v1274_v29, %v590_v46 }
 0x103   : > { %v662_v49 = vmax.f32 %v516_v43, 0.0  ;;  %v678_v50 = vmax.f32 %v596_v44, 0.0 }
 0x104   : > { %v661_v51 = vmax.f32 %v511_v47, 0.0  ;;  %v677_v52 = vmax.f32 %v591_v48, 0.0  ;;  %v923_v53 = vpop.f32.mrb[4].mxu0  ;;  %v947_v54 = vpop.f32.mrb[4].mxu1 }
 0x105   : > { %694 = vst [vmem:[%s1283_s25 + $0x18] sm:$0xff] %v662_v49  ;;  %710 = vst [vmem:[%s1283_s25 + $0x98] sm:$0xff] %v678_v50  ;;  %v526_v55 = vadd.f32 %v923_v53, %v1274_v29  ;;  %v606_v56 = vadd.f32 %v947_v54, %v1274_v29  ;;  %v520_v57 = vpop.f32.mrb[5].mxu0  ;;  %v600_v58 = vpop.f32.mrb[5].mxu1 }
 0x106   : > { %693 = vst [vmem:[%s1283_s25 + $0x10] sm:$0xff] %v661_v51  ;;  %709 = vst [vmem:[%s1283_s25 + $0x90] sm:$0xff] %v677_v52  ;;  %v521_v59 = vadd.f32 %v1274_v29, %v520_v57  ;;  %v601_v60 = vadd.f32 %v1274_v29, %v600_v58 }
 0x107   : > { %v664_v61 = vmax.f32 %v526_v55, 0.0  ;;  %v680_v62 = vmax.f32 %v606_v56, 0.0 }
 0x108   : > { %v663_v63 = vmax.f32 %v521_v59, 0.0  ;;  %v679_v0 = vmax.f32 %v601_v60, 0.0  ;;  %v926_v1 = vpop.f32.mrb[6].mxu0  ;;  %v950_v2 = vpop.f32.mrb[6].mxu1 }
 0x109   : > { %696 = vst [vmem:[%s1283_s25 + $0x28] sm:$0xff] %v664_v61  ;;  %712 = vst [vmem:[%s1283_s25 + $0xa8] sm:$0xff] %v680_v62  ;;  %v536_v3 = vadd.f32 %v926_v1, %v1274_v29  ;;  %v616_v4 = vadd.f32 %v950_v2, %v1274_v29  ;;  %v530_v5 = vpop.f32.mrb[7].mxu0  ;;  %v610_v6 = vpop.f32.mrb[7].mxu1 }
 0x10a   : > { %695 = vst [vmem:[%s1283_s25 + $0x20] sm:$0xff] %v663_v63  ;;  %711 = vst [vmem:[%s1283_s25 + $0xa0] sm:$0xff] %v679_v0  ;;  %v531_v7 = vadd.f32 %v1274_v29, %v530_v5  ;;  %v611_v8 = vadd.f32 %v1274_v29, %v610_v6 }
 0x10b   : > { %v666_v9 = vmax.f32 %v536_v3, 0.0  ;;  %v682_v10 = vmax.f32 %v616_v4, 0.0 }
 0x10c   : > { %v665_v12 = vmax.f32 %v531_v7, 0.0  ;;  %v681_v14 = vmax.f32 %v611_v8, 0.0  ;;  %v929_v15 = vpop.f32.mrb[8].mxu0  ;;  %v953_v16 = vpop.f32.mrb[8].mxu1 }
 0x10d   : > { %698 = vst [vmem:[%s1283_s25 + $0x38] sm:$0xff] %v666_v9  ;;  %714 = vst [vmem:[%s1283_s25 + $0xb8] sm:$0xff] %v682_v10  ;;  %v546_v17 = vadd.f32 %v929_v15, %v1274_v29  ;;  %v626_v18 = vadd.f32 %v953_v16, %v1274_v29  ;;  %v540_v19 = vpop.f32.mrb[9].mxu0  ;;  %v620_v20 = vpop.f32.mrb[9].mxu1 }
 0x10e   : > { %697 = vst [vmem:[%s1283_s25 + $0x30] sm:$0xff] %v665_v12  ;;  %713 = vst [vmem:[%s1283_s25 + $0xb0] sm:$0xff] %v681_v14  ;;  %v541_v21 = vadd.f32 %v1274_v29, %v540_v19  ;;  %v621_v22 = vadd.f32 %v1274_v29, %v620_v20 }
 0x10f   : > { %v668_v23 = vmax.f32 %v546_v17, 0.0  ;;  %v684_v24 = vmax.f32 %v626_v18, 0.0 }
 0x110   : > { %v667_v25 = vmax.f32 %v541_v21, 0.0  ;;  %v683_v26 = vmax.f32 %v621_v22, 0.0  ;;  %v932_v11 = vpop.f32.mrb[10].mxu0  ;;  %v956_v27 = vpop.f32.mrb[10].mxu1 }
 0x111   : > { %700 = vst [vmem:[%s1283_s25 + $0x48] sm:$0xff] %v668_v23  ;;  %716 = vst [vmem:[%s1283_s25 + $0xc8] sm:$0xff] %v684_v24  ;;  %v556_v28 = vadd.f32 %v932_v11, %v1274_v29  ;;  %v636_v30 = vadd.f32 %v956_v27, %v1274_v29  ;;  %v550_v13 = vpop.f32.mrb[11].mxu0  ;;  %v630_v31 = vpop.f32.mrb[11].mxu1 }
 0x112   : > { %699 = vst [vmem:[%s1283_s25 + $0x40] sm:$0xff] %v667_v25  ;;  %715 = vst [vmem:[%s1283_s25 + $0xc0] sm:$0xff] %v683_v26  ;;  %v551_v32 = vadd.f32 %v1274_v29, %v550_v13  ;;  %v631_v33 = vadd.f32 %v1274_v29, %v630_v31 }
 0x113   : > { %v670_v34 = vmax.f32 %v556_v28, 0.0  ;;  %v686_v35 = vmax.f32 %v636_v30, 0.0 }
 0x114   : > { %v669_v36 = vmax.f32 %v551_v32, 0.0  ;;  %v685_v37 = vmax.f32 %v631_v33, 0.0  ;;  %v935_v38 = vpop.f32.mrb[12].mxu0  ;;  %v959_v39 = vpop.f32.mrb[12].mxu1 }
 0x115   : > { %702 = vst [vmem:[%s1283_s25 + $0x58] sm:$0xff] %v670_v34  ;;  %718 = vst [vmem:[%s1283_s25 + $0xd8] sm:$0xff] %v686_v35  ;;  %v566_v40 = vadd.f32 %v935_v38, %v1274_v29  ;;  %v646_v41 = vadd.f32 %v959_v39, %v1274_v29  ;;  %v560_v42 = vpop.f32.mrb[13].mxu0  ;;  %v640_v43 = vpop.f32.mrb[13].mxu1 }
 0x116   : > { %701 = vst [vmem:[%s1283_s25 + $0x50] sm:$0xff] %v669_v36  ;;  %717 = vst [vmem:[%s1283_s25 + $0xd0] sm:$0xff] %v685_v37  ;;  %v561_v44 = vadd.f32 %v1274_v29, %v560_v42  ;;  %v641_v45 = vadd.f32 %v1274_v29, %v640_v43 }
 0x117   : > { %v672_v46 = vmax.f32 %v566_v40, 0.0  ;;  %v688_v47 = vmax.f32 %v646_v41, 0.0 }
 0x118   : > { %v671_v48 = vmax.f32 %v561_v44, 0.0  ;;  %v687_v49 = vmax.f32 %v641_v45, 0.0  ;;  %v938_v50 = vpop.f32.mrb[14].mxu0  ;;  %v962_v51 = vpop.f32.mrb[14].mxu1 }
 0x119   : > { %704 = vst [vmem:[%s1283_s25 + $0x68] sm:$0xff] %v672_v46  ;;  %720 = vst [vmem:[%s1283_s25 + $0xe8] sm:$0xff] %v688_v47  ;;  %v576_v52 = vadd.f32 %v938_v50, %v1274_v29  ;;  %v656_v53 = vadd.f32 %v962_v51, %v1274_v29  ;;  %v570_v54 = vpop.f32.mrb[15].mxu0  ;;  %v650_v55 = vpop.f32.mrb[15].mxu1 }
 0x11a   : > { %703 = vst [vmem:[%s1283_s25 + $0x60] sm:$0xff] %v671_v48  ;;  %719 = vst [vmem:[%s1283_s25 + $0xe0] sm:$0xff] %v687_v49  ;;  %v571_v56 = vadd.f32 %v1274_v29, %v570_v54  ;;  %v651_v57 = vadd.f32 %v1274_v29, %v650_v55 }
 0x11b   : > { %v674_v58 = vmax.f32 %v576_v52, 0.0  ;;  %v690_v59 = vmax.f32 %v656_v53, 0.0 }
 0x11c   : > { %v673_v60 = vmax.f32 %v571_v56, 0.0  ;;  %v689_v61 = vmax.f32 %v651_v57, 0.0 }
 0x11d   : > { %706 = vst [vmem:[%s1283_s25 + $0x78] sm:$0xff] %v674_v58  ;;  %722 = vst [vmem:[%s1283_s25 + $0xf8] sm:$0xff] %v690_v59 }
 0x11e   : > { %705 = vst [vmem:[%s1283_s25 + $0x70] sm:$0xff] %v673_v60  ;;  %721 = vst [vmem:[%s1283_s25 + $0xf0] sm:$0xff] %v689_v61 }
 0x11f PF: > { %s15_s20 = sadd.s32 1, %s1057_s20   ;;  %s1362_s18 = smov %s1053_s19 }
 0x120   : > { %p12_p5 = scmp.ge.s32.totalorder %s15_s20, 4   ;;  %s1363_s19 = smov %s1365_s21 }
 0x122   :  { %14 = sbr.rel (!%p12_p5) target bundleno = 2 (0x2), region = 70 }

// kernel: bottleneck_forward.3
= control target key start
LH: loop header
LB: loop body
LE: loop exit
PB: predicated region body
PF: predicated region fallthrough
CT: control target
= control target key end

     0   :  { %s3383_s27 = smov 0   ;;  %s4119_s0 = inlined_call_operand.vmem [shape: f32[8,9,9,128], index: 0, kind: input, shape index: {}]   ;;  %s4120_s1 = inlined_call_operand.vmem [shape: f32[9,128,128], index: 1, kind: input, shape index: {}]   ;;  %s4121_s2 = inlined_call_operand.vmem [shape: f32[1,128], index: 2, kind: input, shape index: {}]   ;;  %s4122_s3 = inlined_call_operand.vmem [shape: f32[128,128], index: 3, kind: input, shape index: {}]   ;;  %s4123_s4 = inlined_call_operand.vmem [shape: f32[2,8,8,128], index: 4, kind: input, shape index: {}]   ;;  %s4124_s5 = inlined_call_operand.vmem [shape: f32[1,128], index: 5, kind: input, shape index: {}]   ;;  %s4125_s6 = inlined_call_operand.vmem [shape: f32[1,128], index: 6, kind: input, shape index: {}]   ;;  %s4126_s7 = inlined_call_operand.vmem [shape: f32[128,128], index: 7, kind: input, shape index: {}]   ;;  %s4127_s8 = inlined_call_operand.vmem [shape: f32[2,8,8,128], index: 8, kind: output, shape index: {}]  }
   0x1 LB: > { %s3389_s28 = sadd.s32 4294967295, %s3336_s27   ;;  %p1951_p0 = scmp.ge.s32.totalorder %s3336_s27, 1  ;;  %s3336_s27 = sphi %s3383_s27, %s18_s27  }
   0x2   : > { %p274_p1 = scmp.lt.s32.totalorder %s3336_s27, 3 }
   0x4   : > { %p275_p2 = pnand %p1951_p0, %p274_p1 }
   0x5   : > { %v2006_v0 = vld [vmem:[%s4120_s1 + $0x180] sm:$0xff] (!%p275_p2)  ;;  %v2007_v1 = vld [vmem:[%s4120_s1 + $0x188] sm:$0xff] (!%p275_p2)  ;;  %v2008_v2 = vld [vmem:[%s4120_s1 + $0x190] sm:$0xff] (!%p275_p2)  ;;  %s1952_s13 = sshll.u32 (!%p275_p2), %s3389_s28, 2  ;;  %p321_p4 = scmp.lt.s32.totalorder (!%p275_p2), %s3389_s28, 1 }
   0x6   : > { %278 = sbr.rel (%p275_p2) target bundleno = 646 (0x286), region = 52  ;;  %v2993_v3 = vpack.c.bf16 (!%p275_p2), %v2007_v1, %v2006_v0  ;;  %v2009_v4 = vld [vmem:[%s4120_s1 + $0x198] sm:$0xff] (!%p275_p2)  ;;  %p315_p3 = scmp.lt.s32.totalorder (!%p275_p2), %s1952_s13, 7  ;;  %v2010_v6 = vld [vmem:[%s4120_s1 + $0x1a0] sm:$0xff] (!%p275_p2)  ;;  %v2011_v7 = vld [vmem:[%s4120_s1 + $0x1a8] sm:$0xff] (!%p275_p2) }
   0x7   : > { %v2997_v5 = vpack.c.bf16 (!%p275_p2), %v2009_v4, %v2008_v2  ;;  %v3001_v8 = vpack.c.bf16 (!%p275_p2), %v2011_v7, %v2010_v6  ;;  %v1966_v9 = vld [vmem:[%s4120_s1 + $0x80] sm:$0xff] (!%p275_p2)  ;;  %v1967_v10 = vld [vmem:[%s4120_s1 + $0x88] sm:$0xff] (!%p275_p2)  ;;  %v2012_v11 = vld [vmem:[%s4120_s1 + $0x1b0] sm:$0xff] (!%p275_p2) }
   0x8   : > { %2994 = vmatprep.subr.bf16.mxu0 (!%p275_p2), %v2993_v3  ;;  %v2013_v12 = vld [vmem:[%s4120_s1 + $0x1b8] sm:$0xff] (!%p275_p2)  ;;  %v2897_v13 = vpack.c.bf16 (!%p275_p2), %v1967_v10, %v1966_v9  ;;  %v1968_v14 = vld [vmem:[%s4120_s1 + $0x90] sm:$0xff] (!%p275_p2)  ;;  %v1970_v18 = vld [vmem:[%s4120_s1 + $0xa0] sm:$0xff] (!%p275_p2) }
   0x9   : > { %2996 = vmatpush3.bf16.msra.mxu0 (!%p275_p2), %v2993_v3  ;;  %v1969_v15 = vld [vmem:[%s4120_s1 + $0x98] sm:$0xff] (!%p275_p2)  ;;  %v3005_v19 = vpack.c.bf16 (!%p275_p2), %v2013_v12, %v2012_v11  ;;  %v1971_v20 = vld [vmem:[%s4120_s1 + $0xa8] sm:$0xff] (!%p275_p2)  ;;  %v2014_v21 = vld [vmem:[%s4120_s1 + $0x1c0] sm:$0xff] (!%p275_p2) }
   0xa   : > { %2998 = vmatprep.subr.bf16.mxu0 (!%p275_p2), %v2997_v5  ;;  %2898 = vmatprep.subr.bf16.mxu1 (!%p275_p2), %v2897_v13  ;;  %v2901_v17 = vpack.c.bf16 (!%p275_p2), %v1969_v15, %v1968_v14  ;;  %v2015_v22 = vld [vmem:[%s4120_s1 + $0x1c8] sm:$0xff] (!%p275_p2)  ;;  %v2905_v23 = vpack.c.bf16 (!%p275_p2), %v1971_v20, %v1970_v18  ;;  %v1972_v24 = vld [vmem:[%s4120_s1 + $0xb0] sm:$0xff] (!%p275_p2)  ;;  %v1973_v25 = vld [vmem:[%s4120_s1 + $0xb8] sm:$0xff] (!%p275_p2) }
   0xb   : > { %2900 = vmatpush3.bf16.msra.mxu1 (!%p275_p2), %v2897_v13  ;;  %v3009_v26 = vpack.c.bf16 (!%p275_p2), %v2015_v22, %v2014_v21  ;;  %v2016_v27 = vld [vmem:[%s4120_s1 + $0x1d0] sm:$0xff] (!%p275_p2)  ;;  %v2017_v28 = vld [vmem:[%s4120_s1 + $0x1d8] sm:$0xff] (!%p275_p2)  ;;  %v2909_v29 = vpack.c.bf16 (!%p275_p2), %v1973_v25, %v1972_v24  ;;  %v1974_v30 = vld [vmem:[%s4120_s1 + $0xc0] sm:$0xff] (!%p275_p2) }
   0xc   : > { %2902 = vmatprep.subr.bf16.mxu1 (!%p275_p2), %v2901_v17  ;;  %v1975_v31 = vld [vmem:[%s4120_s1 + $0xc8] sm:$0xff] (!%p275_p2)  ;;  %v3013_v32 = vpack.c.bf16 (!%p275_p2), %v2017_v28, %v2016_v27  ;;  %v2018_v33 = vld [vmem:[%s4120_s1 + $0x1e0] sm:$0xff] (!%p275_p2)  ;;  %v1976_v37 = vld [vmem:[%s4120_s1 + $0xd0] sm:$0xff] (!%p275_p2) }
   0xd   : > { %s4129_s13 = smov (!%p315_p3, %s1952_s13), 7  ;;  %3000 = vmatpush3.bf16.msra.mxu0 %v2997_v5  ;;  %v2019_v34 = vld [vmem:[%s4120_s1 + $0x1e8] sm:$0xff]  ;;  %v2913_v36 = vpack.c.bf16 %v1975_v31, %v1974_v30  ;;  %v1977_v38 = vld [vmem:[%s4120_s1 + $0xd8] sm:$0xff]  ;;  %v2020_v40 = vld [vmem:[%s4120_s1 + $0x1f0] sm:$0xff]  ;;  %s4131_s28 = smov (!%p321_p4, %s3389_s28), 1 }
   0xe   : > { %s3321_s24 = smul.u32 144, %s4129_s13  ;;  %3002 = vmatprep.subr.bf16.mxu0 %v3001_v8  ;;  %v3017_v39 = vpack.c.bf16 %v2019_v34, %v2018_v33  ;;  %v2021_v41 = vld [vmem:[%s4120_s1 + $0x1f8] sm:$0xff]  ;;  %v2917_v42 = vpack.c.bf16 %v1977_v38, %v1976_v37  ;;  %v1978_v43 = vld [vmem:[%s4120_s1 + $0xe0] sm:$0xff]  ;;  %v1979_v44 = vld [vmem:[%s4120_s1 + $0xe8] sm:$0xff]  ;;  %s2147_s19 = sshll.u32 %s4131_s28, 6 }
   0xf   : > { %2904 = vmatpush3.bf16.msra.mxu1 %v2901_v17  ;;  %v3021_v45 = vpack.c.bf16 %v2021_v41, %v2020_v40  ;;  %v2030_v46 = vld [vmem:[%s4120_s1 + $0x200] sm:$0xff]  ;;  %v2031_v47 = vld [vmem:[%s4120_s1 + $0x208] sm:$0xff]  ;;  %v2921_v48 = vpack.c.bf16 %v1979_v44, %v1978_v43  ;;  %v1980_v49 = vld [vmem:[%s4120_s1 + $0xf0] sm:$0xff]  ;;  %s4020_s26 = scalar_lea.vmem %s4123_s4, %s2147_s19  ;;  %s330_s15 = scalar_lea.vmem %s4127_s8, %s2147_s19 }
  0x10   : > { %s3430_s14 = scalar_lea.vmem %s4119_s0, %s3321_s24  ;;  %2906 = vmatprep.subr.bf16.mxu1 %v2905_v23  ;;  %v1981_v50 = vld [vmem:[%s4120_s1 + $0xf8] sm:$0xff]  ;;  %v3025_v51 = vpack.c.bf16 %v2031_v47, %v2030_v46  ;;  %v2032_v52 = vld [vmem:[%s4120_s1 + $0x210] sm:$0xff]  ;;  %v339_v56 = vld [vmem:[%s4120_s1] sm:$0xff] }
  0x11   : > { %v1998_v16 = vld [vmem:[%s3430_s14 + $0x120] sm:$0xff]  ;;  %3004 = vmatpush3.bf16.msra.mxu0 %v3001_v8  ;;  %v1958_v35 = vld [vmem:[%s3430_s14 + $0x90] sm:$0xff]  ;;  %v2033_v53 = vld [vmem:[%s4120_s1 + $0x218] sm:$0xff]  ;;  %v2925_v54 = vpack.c.bf16 %v1981_v50, %v1980_v49 }
  0x12   : > { %2577 = vmatprep.mubr.f32.mxu0 %v1998_v16  ;;  %3006 = vmatprep.subr.bf16.mxu0 %v3005_v19  ;;  %v1999_v55 = vld [vmem:[%s3430_s14 + $0x130] sm:$0xff]  ;;  %v340_v57 = vld [vmem:[%s4120_s1 + $0x8] sm:$0xff]  ;;  %v3029_v58 = vpack.c.bf16 %v2033_v53, %v2032_v52  ;;  %v2000_v59 = vld [vmem:[%s3430_s14 + $0x140] sm:$0xff] }
  0x13   : > { %2908 = vmatpush3.bf16.msra.mxu1 %v2905_v23  ;;  %2445 = vmatprep.mubr.f32.mxu1 %v1958_v35  ;;  %v2034_v60 = vld [vmem:[%s4120_s1 + $0x220] sm:$0xff]  ;;  %v2035_v61 = vld [vmem:[%s4120_s1 + $0x228] sm:$0xff]  ;;  %v2929_v62 = vpack.c.bf16 %v340_v57, %v339_v56  ;;  %v2001_v63 = vld [vmem:[%s3430_s14 + $0x150] sm:$0xff] }
  0x14   : > { %2910 = vmatprep.subr.bf16.mxu1 %v2909_v29  ;;  %v341_v0 = vld [vmem:[%s4120_s1 + $0x10] sm:$0xff]  ;;  %v342_v1 = vld [vmem:[%s4120_s1 + $0x18] sm:$0xff]  ;;  %v3033_v2 = vpack.c.bf16 %v2035_v61, %v2034_v60  ;;  %v2002_v3 = vld [vmem:[%s3430_s14 + $0x160] sm:$0xff] }
  0x15   : > { %3008 = vmatpush3.bf16.msra.mxu0 %v3005_v19  ;;  %v2036_v4 = vld [vmem:[%s4120_s1 + $0x230] sm:$0xff]  ;;  %v2037_v5 = vld [vmem:[%s4120_s1 + $0x238] sm:$0xff]  ;;  %v3538_v6 = vld [vmem:[%s3430_s14 + $0xa0] sm:$0xff]  ;;  %v2933_v7 = vpack.c.bf16 %v342_v1, %v341_v0 }
  0x16   : > { %3010 = vmatprep.subr.bf16.mxu0 %v3009_v26  ;;  %v3541_v8 = vld [vmem:[%s3430_s14 + $0xb0] sm:$0xff]  ;;  %v343_v10 = vld [vmem:[%s4120_s1 + $0x20] sm:$0xff]  ;;  %v344_v11 = vld [vmem:[%s4120_s1 + $0x28] sm:$0xff]  ;;  %v3037_v12 = vpack.c.bf16 %v2037_v5, %v2036_v4 }
  0x17   : > { %2912 = vmatpush3.bf16.msra.mxu1 %v2909_v29  ;;  %v2003_v9 = vld [vmem:[%s3430_s14 + $0x170] sm:$0xff]  ;;  %v2004_v13 = vld [vmem:[%s3430_s14 + $0x180] sm:$0xff]  ;;  %v2039_v15 = vld [vmem:[%s4120_s1 + $0x248] sm:$0xff]  ;;  %v2937_v17 = vpack.c.bf16 %v344_v11, %v343_v10 }
  0x18   : > { %2914 = vmatprep.subr.bf16.mxu1 %v2913_v36  ;;  %v2038_v14 = vld [vmem:[%s4120_s1 + $0x240] sm:$0xff]  ;;  %v3563_v18 = vld [vmem:[%s3430_s14 + $0xd0] sm:$0xff]  ;;  %v346_v21 = vld [vmem:[%s4120_s1 + $0x38] sm:$0xff] }
  0x19   : > { %3012 = vmatpush3.bf16.msra.mxu0 %v3009_v26  ;;  %v3560_v16 = vld [vmem:[%s3430_s14 + $0xc0] sm:$0xff]  ;;  %v2005_v19 = vld [vmem:[%s3430_s14 + $0x190] sm:$0xff]  ;;  %v3041_v22 = vpack.c.bf16 %v2039_v15, %v2038_v14  ;;  %v2041_v25 = vld [vmem:[%s4120_s1 + $0x258] sm:$0xff] }
  0x1a   : > { %3014 = vmatprep.subr.bf16.mxu0 %v3013_v32  ;;  %v345_v20 = vld [vmem:[%s4120_s1 + $0x30] sm:$0xff]  ;;  %v3582_v26 = vld [vmem:[%s3430_s14 + $0xe0] sm:$0xff]  ;;  %v348_v30 = vld [vmem:[%s4120_s1 + $0x48] sm:$0xff] }
  0x1b   : > { %2916 = vmatpush3.bf16.msra.mxu1 %v2913_v36  ;;  %v2022_v23 = vld [vmem:[%s3430_s14 + $0x1b0] sm:$0xff]  ;;  %v2941_v27 = vpack.c.bf16 %v346_v21, %v345_v20  ;;  %v347_v29 = vld [vmem:[%s4120_s1 + $0x40] sm:$0xff]  ;;  %v2043_v33 = vld [vmem:[%s4120_s1 + $0x268] sm:$0xff] }
  0x1c   : > { %2918 = vmatprep.subr.bf16.mxu1 %v2917_v42  ;;  %v2040_v24 = vld [vmem:[%s4120_s1 + $0x250] sm:$0xff]  ;;  %v3602_v34 = vld [vmem:[%s3430_s14 + $0x100] sm:$0xff]  ;;  %v2945_v35 = vpack.c.bf16 %v348_v30, %v347_v29  ;;  %v350_v38 = vld [vmem:[%s4120_s1 + $0x58] sm:$0xff] }
  0x1d   : > { %3016 = vmatpush3.bf16.msra.mxu0 %v3013_v32  ;;  %v3585_v28 = vld [vmem:[%s3430_s14 + $0xf0] sm:$0xff]  ;;  %v3045_v31 = vpack.c.bf16 %v2041_v25, %v2040_v24  ;;  %v2042_v32 = vld [vmem:[%s4120_s1 + $0x260] sm:$0xff]  ;;  %v2045_v41 = vld [vmem:[%s4120_s1 + $0x278] sm:$0xff] }
  0x1e   : > { %3018 = vmatprep.subr.bf16.mxu0 %v3017_v39  ;;  %v331_v36 = vld [vmem:[%s3430_s14] sm:$0xff]  ;;  %v349_v37 = vld [vmem:[%s4120_s1 + $0x50] sm:$0xff]  ;;  %v352_v44 = vld [vmem:[%s4120_s1 + $0x68] sm:$0xff] }
  0x1f   : > { %2920 = vmatpush3.bf16.msra.mxu1 %v2917_v42  ;;  %v2044_v40 = vld [vmem:[%s4120_s1 + $0x270] sm:$0xff]  ;;  %v2949_v42 = vpack.c.bf16 %v350_v38, %v349_v37  ;;  %v351_v43 = vld [vmem:[%s4120_s1 + $0x60] sm:$0xff]  ;;  %v2055_v47 = vld [vmem:[%s4120_s1 + $0x288] sm:$0xff] }
  0x20   : > { %2922 = vmatprep.subr.bf16.mxu1 %v2921_v48  ;;  %v2054_v46 = vld [vmem:[%s4120_s1 + $0x280] sm:$0xff]  ;;  %v353_v49 = vld [vmem:[%s4120_s1 + $0x70] sm:$0xff]  ;;  %v354_v50 = vld [vmem:[%s4120_s1 + $0x78] sm:$0xff] }
  0x21   : > { %3020 = vmatpush3.bf16.msra.mxu0 %v3017_v39  ;;  %v3049_v39 = vpack.c.bf16 %v2043_v33, %v2042_v32  ;;  %v2056_v52 = vld [vmem:[%s4120_s1 + $0x290] sm:$0xff]  ;;  %v2057_v53 = vld [vmem:[%s4120_s1 + $0x298] sm:$0xff]  ;;  %v1982_v56 = vld [vmem:[%s4120_s1 + $0x100] sm:$0xff] }
  0x22   : > { %3022 = vmatprep.subr.bf16.mxu0 %v3021_v45  ;;  %v1983_v57 = vld [vmem:[%s4120_s1 + $0x108] sm:$0xff]  ;;  %v2058_v60 = vld [vmem:[%s4120_s1 + $0x2a0] sm:$0xff]  ;;  %v1984_v0 = vld [vmem:[%s4120_s1 + $0x110] sm:$0xff] }
  0x23   : > { %2924 = vmatpush3.bf16.msra.mxu1 %v2921_v48  ;;  %v2953_v48 = vpack.c.bf16 %v352_v44, %v351_v43  ;;  %v2059_v61 = vld [vmem:[%s4120_s1 + $0x2a8] sm:$0xff]  ;;  %v1985_v1 = vld [vmem:[%s4120_s1 + $0x118] sm:$0xff]  ;;  %v2060_v4 = vld [vmem:[%s4120_s1 + $0x2b0] sm:$0xff] }
  0x24   : > { %2926 = vmatprep.subr.bf16.mxu1 %v2925_v54  ;;  %v2061_v5 = vld [vmem:[%s4120_s1 + $0x2b8] sm:$0xff]  ;;  %v3674_v10 = vld [vmem:[%s3430_s14 + $0x20] sm:$0xff]  ;;  %v2028_v15 = vld [vmem:[%s3430_s14 + $0x210] sm:$0xff] }
  0x25   : > { %3024 = vmatpush3.bf16.msra.mxu0 %v3021_v45  ;;  %v3053_v45 = vpack.c.bf16 %v2045_v41, %v2044_v40  ;;  %v2027_v11 = vld [vmem:[%s3430_s14 + $0x200] sm:$0xff]  ;;  %v3069_v14 = vpack.c.bf16 %v2061_v5, %v2060_v4  ;;  %v3693_v20 = vld [vmem:[%s3430_s14 + $0x30] sm:$0xff]  ;;  %v1989_v25 = vld [vmem:[%s4120_s1 + $0x138] sm:$0xff] }
  0x26   : > { %3026 = vmatprep.subr.bf16.mxu0 %v3025_v51  ;;  %v1988_v24 = vld [vmem:[%s4120_s1 + $0x130] sm:$0xff]  ;;  %v2046_v29 = vld [vmem:[%s3430_s14 + $0x121] sm:$0xff] }
  0x27   : > { %2928 = vmatpush3.bf16.msra.mxu1 %v2925_v54  ;;  %v2957_v54 = vpack.c.bf16 %v354_v50, %v353_v49  ;;  %v2064_v30 = vld [vmem:[%s4120_s1 + $0x2d0] sm:$0xff]  ;;  %v2973_v33 = vpack.c.bf16 %v1989_v25, %v1988_v24  ;;  %v1991_v37 = vld [vmem:[%s4120_s1 + $0x148] sm:$0xff]  ;;  %v1994_v50 = vld [vmem:[%s4120_s1 + $0x160] sm:$0xff] }
  0x28   : > { %2578 = vmatmul.mubr.f32.vlgmr.msra.gmra.mrb[0].mxu0 %v1999_v55  ;;  %2930 = vmatprep.subr.bf16.mxu1 %v2929_v62  ;;  %v2023_v55 = vld [vmem:[%s3430_s14 + $0x1c0] sm:$0xff]  ;;  %v3715_v32 = vld [vmem:[%s3430_s14 + $0x50] sm:$0xff]  ;;  %v2067_v40 = vld [vmem:[%s4120_s1 + $0x2e8] sm:$0xff] }
  0x29   : > { %3028 = vmatpush3.bf16.msra.mxu0 %v3025_v51  ;;  %2580 = vmatprep.mubr.f32.mxu0 %v2000_v59  ;;  %v3057_v51 = vpack.c.bf16 %v2055_v47, %v2054_v46  ;;  %v2024_v59 = vld [vmem:[%s3430_s14 + $0x1d0] sm:$0xff]  ;;  %v591_v43 = vld [vmem:[%s3430_s14 + $0x1] sm:$0xff] }
  0x2a   : > { %3030 = vmatprep.subr.bf16.mxu0 %v3029_v58  ;;  %2446 = vmatmul.mubr.f32.vlgmr.msra.gmra.mrb[0].mxu1 %v3538_v6  ;;  %v3735_v41 = vld [vmem:[%s3430_s14 + $0x70] sm:$0xff]  ;;  %v2050_v5 = vld [vmem:[%s3430_s14 + $0x161] sm:$0xff] }
  0x2b   : > { %2932 = vmatpush3.bf16.msra.mxu1 %v2929_v62  ;;  %2448 = vmatprep.mubr.f32.mxu1 %v3541_v8  ;;  %v2961_v62 = vpack.c.bf16 %v1983_v57, %v1982_v56  ;;  %v1992_v44 = vld [vmem:[%s4120_s1 + $0x150] sm:$0xff]  ;;  %v1997_v57 = vld [vmem:[%s4120_s1 + $0x178] sm:$0xff]  ;;  %v3811_v24 = vld [vmem:[%s3430_s14 + $0x41] sm:$0xff] }
  0x2c   : > { %2581 = vmatmul.mubr.f32.gmra.mrb[2].mxu0 %v2001_v63  ;;  %2934 = vmatprep.subr.bf16.mxu1 %v2933_v7  ;;  %v2025_v63 = vld [vmem:[%s3430_s14 + $0x1e0] sm:$0xff]  ;;  %v2068_v47 = vld [vmem:[%s4120_s1 + $0x2f0] sm:$0xff] }
  0x2d   : > { %3032 = vmatpush3.bf16.msra.mxu0 %v3029_v58  ;;  %2583 = vmatprep.mubr.f32.mxu0 %v2002_v3  ;;  %v3061_v58 = vpack.c.bf16 %v2057_v53, %v2056_v52  ;;  %v2026_v3 = vld [vmem:[%s3430_s14 + $0x1f0] sm:$0xff]  ;;  %v2078_v53 = vld [vmem:[%s4120_s1 + $0x300] sm:$0xff] }
  0x2e   : > { %3034 = vmatprep.subr.bf16.mxu0 %v3033_v2  ;;  %2449 = vmatmul.mubr.f32.gmra.mrb[2].mxu1 %v3560_v16  ;;  %v1996_v56 = vld [vmem:[%s4120_s1 + $0x170] sm:$0xff] }
  0x2f   : > { %2936 = vmatpush3.bf16.msra.mxu1 %v2933_v7  ;;  %2451 = vmatprep.mubr.f32.mxu1 %v3563_v18  ;;  %v3671_v7 = vld [vmem:[%s3430_s14 + $0x10] sm:$0xff] }
  0x30   : > { %2584 = vmatmul.mubr.f32.gmra.mrb[4].mxu0 %v2003_v9  ;;  %2938 = vmatprep.subr.bf16.mxu1 %v2937_v17  ;;  %v2965_v9 = vpack.c.bf16 %v1985_v1, %v1984_v0  ;;  %v2048_v0 = vld [vmem:[%s3430_s14 + $0x141] sm:$0xff]  ;;  %v2053_v25 = vld [vmem:[%s3430_s14 + $0x191] sm:$0xff] }
  0x31   : > { %3036 = vmatpush3.bf16.msra.mxu0 %v3033_v2  ;;  %2586 = vmatprep.mubr.f32.mxu0 %v2004_v13  ;;  %v3065_v2 = vpack.c.bf16 %v2059_v61, %v2058_v60  ;;  %v1987_v13 = vld [vmem:[%s4120_s1 + $0x128] sm:$0xff]  ;;  %v2081_v60 = vld [vmem:[%s4120_s1 + $0x318] sm:$0xff]  ;;  %v2989_v61 = vpack.c.bf16 %v1997_v57, %v1996_v56  ;;  %v2082_v1 = vld [vmem:[%s4120_s1 + $0x320] sm:$0xff] }
  0x32   : > { %3038 = vmatprep.subr.bf16.mxu0 %v3037_v12  ;;  %2452 = vmatmul.mubr.f32.gmra.mrb[4].mxu1 %v3582_v26  ;;  %v2077_v56 = vld [vmem:[%s3430_s14 + $0x80] sm:$0xff]  ;;  %v2113_v57 = vld [vmem:[%s4120_s1 + $0x3d8] sm:$0xff] }
  0x33   : > { %2940 = vmatpush3.bf16.msra.mxu1 %v2937_v17  ;;  %2454 = vmatprep.mubr.f32.mxu1 %v3585_v28  ;;  %v2062_v17 = vld [vmem:[%s4120_s1 + $0x2c0] sm:$0xff] }
  0x34   : > { %2587 = vmatmul.mubr.f32.gmra.mrb[6].mxu0 %v2005_v19  ;;  %2942 = vmatprep.subr.bf16.mxu1 %v2941_v27  ;;  %v2063_v19 = vld [vmem:[%s4120_s1 + $0x2c8] sm:$0xff] }
  0x35   : > { %3040 = vmatpush3.bf16.msra.mxu0 %v3037_v12  ;;  %2621 = vmatprep.mubr.f32.mxu0 %v2022_v23  ;;  %v1986_v12 = vld [vmem:[%s4120_s1 + $0x120] sm:$0xff] }
  0x36   : > { %3042 = vmatprep.subr.bf16.mxu0 %v3041_v22  ;;  %2455 = vmatmul.mubr.f32.gmra.mrb[6].mxu1 %v3602_v34  ;;  %v2969_v21 = vpack.c.bf16 %v1987_v13, %v1986_v12  ;;  %v2029_v23 = vld [vmem:[%s3430_s14 + $0x220] sm:$0xff]  ;;  %v3792_v12 = vld [vmem:[%s3430_s14 + $0x11] sm:$0xff] }
  0x37   : > { %2944 = vmatpush3.bf16.msra.mxu1 %v2941_v27  ;;  %2489 = vmatprep.mubr.f32.mxu1 %v331_v36  ;;  %v3073_v27 = vpack.c.bf16 %v2063_v19, %v2062_v17  ;;  %v1990_v36 = vld [vmem:[%s4120_s1 + $0x140] sm:$0xff] }
  0x38   : > { %2946 = vmatprep.subr.bf16.mxu1 %v2945_v35  ;;  %v3795_v13 = vld [vmem:[%s3430_s14 + $0x21] sm:$0xff] }
  0x39   : > { %3044 = vmatpush3.bf16.msra.mxu0 %v3041_v22  ;;  %v3696_v22 = vld [vmem:[%s3430_s14 + $0x40] sm:$0xff] }
  0x3a   : > { %3046 = vmatprep.subr.bf16.mxu0 %v3045_v31  ;;  %v2052_v17 = vld [vmem:[%s3430_s14 + $0x181] sm:$0xff] }
  0x3b   : > { %2948 = vmatpush3.bf16.msra.mxu1 %v2945_v35  ;;  %v3718_v35 = vld [vmem:[%s3430_s14 + $0x60] sm:$0xff] }
  0x3c   : > { %2950 = vmatprep.subr.bf16.mxu1 %v2949_v42  ;;  %v2086_v19 = vld [vmem:[%s4120_s1 + $0x340] sm:$0xff] }
  0x3d   : > { %3048 = vmatpush3.bf16.msra.mxu0 %v3045_v31  ;;  %v2065_v31 = vld [vmem:[%s4120_s1 + $0x2d8] sm:$0xff] }
  0x3e   : > { %3050 = vmatprep.subr.bf16.mxu0 %v3049_v39  ;;  %v3077_v38 = vpack.c.bf16 %v2065_v31, %v2064_v30  ;;  %v2089_v30 = vld [vmem:[%s4120_s1 + $0x358] sm:$0xff] }
  0x3f   : > { %2952 = vmatpush3.bf16.msra.mxu1 %v2949_v42  ;;  %v2977_v42 = vpack.c.bf16 %v1991_v37, %v1990_v36  ;;  %v3823_v31 = vld [vmem:[%s3430_s14 + $0x51] sm:$0xff]  ;;  %v2090_v37 = vld [vmem:[%s4120_s1 + $0x360] sm:$0xff] }
  0x40   : > { %2954 = vmatprep.subr.bf16.mxu1 %v2953_v48 }
  0x41   : > { %3052 = vmatpush3.bf16.msra.mxu0 %v3049_v39  ;;  %v2066_v39 = vld [vmem:[%s4120_s1 + $0x2e0] sm:$0xff] }
  0x42   : > { %3054 = vmatprep.subr.bf16.mxu0 %v3053_v45  ;;  %v3081_v46 = vpack.c.bf16 %v2067_v40, %v2066_v39  ;;  %v3838_v39 = vld [vmem:[%s3430_s14 + $0x71] sm:$0xff] }
  0x43   : > { %2956 = vmatpush3.bf16.msra.mxu1 %v2953_v48  ;;  %v2069_v48 = vld [vmem:[%s4120_s1 + $0x2f8] sm:$0xff] }
  0x44   : > { %2958 = vmatprep.subr.bf16.mxu1 %v2957_v54  ;;  %v3085_v52 = vpack.c.bf16 %v2069_v48, %v2068_v47  ;;  %v2104_v47 = vld [vmem:[%s4120_s1 + $0x390] sm:$0xff]  ;;  %v2105_v48 = vld [vmem:[%s4120_s1 + $0x398] sm:$0xff] }
  0x45   : > { %3056 = vmatpush3.bf16.msra.mxu0 %v3053_v45  ;;  %v1993_v45 = vld [vmem:[%s4120_s1 + $0x158] sm:$0xff] }
  0x46   : > { %3058 = vmatprep.subr.bf16.mxu0 %v3057_v51  ;;  %v2981_v49 = vpack.c.bf16 %v1993_v45, %v1992_v44  ;;  %v2102_v44 = vld [vmem:[%s4120_s1 + $0x380] sm:$0xff]  ;;  %v2103_v45 = vld [vmem:[%s4120_s1 + $0x388] sm:$0xff] }
  0x47   : > { %2960 = vmatpush3.bf16.msra.mxu1 %v2957_v54  ;;  %v2079_v54 = vld [vmem:[%s4120_s1 + $0x308] sm:$0xff] }
  0x48   : > { %2622 = vmatmul.mubr.f32.vlgmr.msra.gmra.mrb[0].mxu0 %v2023_v55  ;;  %2962 = vmatprep.subr.bf16.mxu1 %v2961_v62 }
  0x49   : > { %3060 = vmatpush3.bf16.msra.mxu0 %v3057_v51  ;;  %2624 = vmatprep.mubr.f32.mxu0 %v2024_v59  ;;  %v1995_v51 = vld [vmem:[%s4120_s1 + $0x168] sm:$0xff]  ;;  %v2080_v59 = vld [vmem:[%s4120_s1 + $0x310] sm:$0xff] }
  0x4a   : > { %3062 = vmatprep.subr.bf16.mxu0 %v3061_v58  ;;  %2490 = vmatmul.mubr.f32.vlgmr.msra.gmra.mrb[0].mxu1 %v3671_v7  ;;  %v2985_v55 = vpack.c.bf16 %v1995_v51, %v1994_v50  ;;  %v2106_v50 = vld [vmem:[%s4120_s1 + $0x3a0] sm:$0xff]  ;;  %v2107_v51 = vld [vmem:[%s4120_s1 + $0x3a8] sm:$0xff] }
  0x4b   : > { %2964 = vmatpush3.bf16.msra.mxu1 %v2961_v62  ;;  %2492 = vmatprep.mubr.f32.mxu1 %v3674_v10  ;;  %v2047_v62 = vld [vmem:[%s3430_s14 + $0x131] sm:$0xff] }
  0x4c   : > { %2625 = vmatmul.mubr.f32.gmra.mrb[2].mxu0 %v2025_v63  ;;  %2966 = vmatprep.subr.bf16.mxu1 %v2965_v9  ;;  %v3093_v63 = vpack.c.bf16 %v2081_v60, %v2080_v59  ;;  %v2116_v60 = vld [vmem:[%s4120_s1 + $0x3f0] sm:$0xff] }
  0x4d   : > { %3064 = vmatpush3.bf16.msra.mxu0 %v3061_v58  ;;  %2627 = vmatprep.mubr.f32.mxu0 %v2026_v3  ;;  %v3089_v58 = vpack.c.bf16 %v2079_v54, %v2078_v53  ;;  %v2049_v3 = vld [vmem:[%s3430_s14 + $0x151] sm:$0xff] }
  0x4e   : > { %3066 = vmatprep.subr.bf16.mxu0 %v3065_v2  ;;  %2493 = vmatmul.mubr.f32.gmra.mrb[2].mxu1 %v3693_v20  ;;  %v2108_v53 = vld [vmem:[%s4120_s1 + $0x3b0] sm:$0xff]  ;;  %v2109_v54 = vld [vmem:[%s4120_s1 + $0x3b8] sm:$0xff] }
  0x4f   : > { %2968 = vmatpush3.bf16.msra.mxu1 %v2965_v9  ;;  %2495 = vmatprep.mubr.f32.mxu1 %v3696_v22  ;;  %v2084_v9 = vld [vmem:[%s4120_s1 + $0x330] sm:$0xff] }
  0x50   : > { %2628 = vmatmul.mubr.f32.gmra.mrb[4].mxu0 %v2027_v11  ;;  %2970 = vmatprep.subr.bf16.mxu1 %v2969_v21  ;;  %v2085_v11 = vld [vmem:[%s4120_s1 + $0x338] sm:$0xff] }
  0x51   : > { %3068 = vmatpush3.bf16.msra.mxu0 %v3065_v2  ;;  %2630 = vmatprep.mubr.f32.mxu0 %v2028_v15  ;;  %v2083_v2 = vld [vmem:[%s4120_s1 + $0x328] sm:$0xff]  ;;  %v3101_v15 = vpack.c.bf16 %v2085_v11, %v2084_v9  ;;  %v2132_v11 = vld [vmem:[%s4120_s1 + $0x430] sm:$0xff] }
  0x52   : > { %3070 = vmatprep.subr.bf16.mxu0 %v3069_v14  ;;  %2496 = vmatmul.mubr.f32.gmra.mrb[4].mxu1 %v3715_v32  ;;  %v3097_v4 = vpack.c.bf16 %v2083_v2, %v2082_v1  ;;  %v2128_v1 = vld [vmem:[%s4120_s1 + $0x410] sm:$0xff]  ;;  %v2129_v2 = vld [vmem:[%s4120_s1 + $0x418] sm:$0xff] }
  0x53   : > { %2972 = vmatpush3.bf16.msra.mxu1 %v2969_v21  ;;  %2498 = vmatprep.mubr.f32.mxu1 %v3718_v35  ;;  %v2087_v21 = vld [vmem:[%s4120_s1 + $0x348] sm:$0xff] }
  0x54   : > { %2631 = vmatmul.mubr.f32.gmra.mrb[6].mxu0 %v2029_v23  ;;  %2974 = vmatprep.subr.bf16.mxu1 %v2973_v33  ;;  %v3808_v23 = vld [vmem:[%s3430_s14 + $0x31] sm:$0xff] }
  0x55   : > { %3072 = vmatpush3.bf16.msra.mxu0 %v3069_v14  ;;  %2665 = vmatprep.mubr.f32.mxu0 %v2046_v29  ;;  %v2051_v14 = vld [vmem:[%s3430_s14 + $0x171] sm:$0xff] }
  0x56   : > { %3074 = vmatprep.subr.bf16.mxu0 %v3073_v27  ;;  %2499 = vmatmul.mubr.f32.gmra.mrb[6].mxu1 %v3735_v41  ;;  %v2088_v29 = vld [vmem:[%s4120_s1 + $0x350] sm:$0xff] }
  0x57   : > { %2976 = vmatpush3.bf16.msra.mxu1 %v2973_v33  ;;  %2533 = vmatprep.mubr.f32.mxu1 %v591_v43  ;;  %v3826_v33 = vld [vmem:[%s3430_s14 + $0x61] sm:$0xff]  ;;  %v3109_v36 = vpack.c.bf16 %v2089_v30, %v2088_v29 }
  0x58   : > { %2978 = vmatprep.subr.bf16.mxu1 %v2977_v42  ;;  %v1646_v30 = vld [vmem:[%s4126_s7] sm:$0xff] }
  0x59   : > { %3076 = vmatpush3.bf16.msra.mxu0 %v3073_v27  ;;  %v3105_v27 = vpack.c.bf16 %v2087_v21, %v2086_v19  ;;  %v2137_v19 = vld [vmem:[%s4120_s1 + $0x458] sm:$0xff]  ;;  %v2139_v21 = vld [vmem:[%s4120_s1 + $0x468] sm:$0xff] }
  0x5a   : > { %3078 = vmatprep.subr.bf16.mxu0 %v3077_v38 }
  0x5b   : > { %2980 = vmatpush3.bf16.msra.mxu1 %v2977_v42  ;;  %v2093_v42 = vld [vmem:[%s4120_s1 + $0x378] sm:$0xff] }
  0x5c   : > { %2982 = vmatprep.subr.bf16.mxu1 %v2981_v49 }
  0x5d   : > { %3080 = vmatpush3.bf16.msra.mxu0 %v3077_v38  ;;  %v2091_v38 = vld [vmem:[%s4120_s1 + $0x368] sm:$0xff] }
  0x5e   : > { %3082 = vmatprep.subr.bf16.mxu0 %v3081_v46  ;;  %v3113_v40 = vpack.c.bf16 %v2091_v38, %v2090_v37  ;;  %v1648_v37 = vld [vmem:[%s4126_s7 + $0x10] sm:$0xff] }
  0x5f   : > { %2984 = vmatpush3.bf16.msra.mxu1 %v2981_v49  ;;  %v3125_v49 = vpack.c.bf16 %v2105_v48, %v2104_v47  ;;  %v1655_v48 = vld [vmem:[%s4126_s7 + $0x48] sm:$0xff] }
  0x60   : > { %2986 = vmatprep.subr.bf16.mxu1 %v2985_v55 }
  0x61   : > { %3084 = vmatpush3.bf16.msra.mxu0 %v3081_v46  ;;  %v3121_v46 = vpack.c.bf16 %v2103_v45, %v2102_v44  ;;  %v1652_v45 = vld [vmem:[%s4126_s7 + $0x30] sm:$0xff] }
  0x62   : > { %3086 = vmatprep.subr.bf16.mxu0 %v3085_v52 }
  0x63   : > { %2988 = vmatpush3.bf16.msra.mxu1 %v2985_v55  ;;  %v2111_v55 = vld [vmem:[%s4120_s1 + $0x3c8] sm:$0xff] }
  0x64   : > { %2990 = vmatprep.subr.bf16.mxu1 %v2989_v61 }
  0x65   : > { %3088 = vmatpush3.bf16.msra.mxu0 %v3085_v52  ;;  %v3129_v52 = vpack.c.bf16 %v2107_v51, %v2106_v50  ;;  %v1658_v51 = vld [vmem:[%s4126_s7 + $0x60] sm:$0xff] }
  0x66   : > { %3090 = vmatprep.subr.bf16.mxu0 %v3089_v58 }
  0x67   : > { %2992 = vmatpush3.bf16.msra.mxu1 %v2989_v61 }
  0x68   : > { %2666 = vmatmul.mubr.f32.vlgmr.msra.gmra.mrb[0].mxu0 %v2047_v62  ;;  %v2126_v62 = vld [vmem:[%s4120_s1 + $0x400] sm:$0xff] }
  0x69   : > { %3092 = vmatpush3.bf16.msra.mxu0 %v3089_v58  ;;  %2668 = vmatprep.mubr.f32.mxu0 %v2048_v0  ;;  %v2115_v58 = vld [vmem:[%s4120_s1 + $0x3e8] sm:$0xff] }
  0x6a   : > { %3094 = vmatprep.subr.bf16.mxu0 %v3093_v63  ;;  %2534 = vmatmul.mubr.f32.vlgmr.msra.gmra.mrb[0].mxu1 %v3792_v12 }
  0x6b   : > { %2536 = vmatprep.mubr.f32.mxu1 %v3795_v13 }
  0x6c   : > { %2669 = vmatmul.mubr.f32.gmra.mrb[2].mxu0 %v2049_v3  ;;  %v3157_v3 = vpack.c.bf16 %v2129_v2, %v2128_v1  ;;  %v1586_v1 = vld [vmem:[%s4122_s3 + $0x10] sm:$0xff]  ;;  %v1587_v2 = vld [vmem:[%s4122_s3 + $0x18] sm:$0xff] }
  0x6d   : > { %3096 = vmatpush3.bf16.msra.mxu0 %v3093_v63  ;;  %2671 = vmatprep.mubr.f32.mxu0 %v2050_v5  ;;  %v2127_v63 = vld [vmem:[%s4120_s1 + $0x408] sm:$0xff] }
  0x6e   : > { %3098 = vmatprep.subr.bf16.mxu0 %v3097_v4  ;;  %2537 = vmatmul.mubr.f32.gmra.mrb[2].mxu1 %v3808_v23  ;;  %v3153_v0 = vpack.c.bf16 %v2127_v63, %v2126_v62  ;;  %v2131_v5 = vld [vmem:[%s4120_s1 + $0x428] sm:$0xff] }
  0x6f   : > { %2539 = vmatprep.mubr.f32.mxu1 %v3811_v24 }
  0x70   : > { %2672 = vmatmul.mubr.f32.gmra.mrb[4].mxu0 %v2051_v14  ;;  %v2133_v14 = vld [vmem:[%s4120_s1 + $0x438] sm:$0xff] }
  0x71   : > { %3100 = vmatpush3.bf16.msra.mxu0 %v3097_v4  ;;  %2674 = vmatprep.mubr.f32.mxu0 %v2052_v17  ;;  %v2130_v4 = vld [vmem:[%s4120_s1 + $0x420] sm:$0xff]  ;;  %v2101_v17 = vld [vmem:[%s3430_s14 + $0x110] sm:$0xff] }
  0x72   : > { %3102 = vmatprep.subr.bf16.mxu0 %v3101_v15  ;;  %2540 = vmatmul.mubr.f32.gmra.mrb[4].mxu1 %v3823_v31  ;;  %v3161_v9 = vpack.c.bf16 %v2131_v5, %v2130_v4 }
  0x73   : > { %2542 = vmatprep.mubr.f32.mxu1 %v3826_v33 }
  0x74   : > { %2675 = vmatmul.mubr.f32.gmra.mrb[6].mxu0 %v2053_v25 }
  0x75   : > { %3104 = vmatpush3.bf16.msra.mxu0 %v3101_v15  ;;  %2709 = vmatprep.mubr.f32.mxu0 %v3671_v7  ;;  %v2092_v7 = vld [vmem:[%s4120_s1 + $0x370] sm:$0xff]  ;;  %v2135_v15 = vld [vmem:[%s4120_s1 + $0x448] sm:$0xff] }
  0x76   : > { %3106 = vmatprep.subr.bf16.mxu0 %v3105_v27  ;;  %2543 = vmatmul.mubr.f32.gmra.mrb[6].mxu1 %v3838_v39  ;;  %v3117_v43 = vpack.c.bf16 %v2093_v42, %v2092_v7  ;;  %v1650_v42 = vld [vmem:[%s4126_s7 + $0x20] sm:$0xff] }
  0x79   : > { %3108 = vmatpush3.bf16.msra.mxu0 %v3105_v27  ;;  %v2140_v27 = vld [vmem:[%s4120_s1 + $0x470] sm:$0xff] }
  0x7a   : > { %3110 = vmatprep.subr.bf16.mxu0 %v3109_v36 }
  0x7d   : > { %3112 = vmatpush3.bf16.msra.mxu0 %v3109_v36  ;;  %v1647_v36 = vld [vmem:[%s4126_s7 + $0x8] sm:$0xff] }
  0x7e   : > { %3114 = vmatprep.subr.bf16.mxu0 %v3113_v40  ;;  %v3185_v38 = vpack.c.bf16 %v1647_v36, %v1646_v30 }
  0x80   : > { %3186 = vmatprep.subr.bf16.mxu1 %v3185_v38 }
  0x81   : > { %3116 = vmatpush3.bf16.msra.mxu0 %v3113_v40  ;;  %v1649_v40 = vld [vmem:[%s4126_s7 + $0x18] sm:$0xff]  ;;  %3188 = vmatpush3.bf16.msra.mxu1 %v3185_v38  ;;  %v1606_v38 = vld [vmem:[%s4020_s26 + $0x30] sm:$0xff] }
  0x82   : > { %3118 = vmatprep.subr.bf16.mxu0 %v3117_v43  ;;  %v3189_v7 = vpack.c.bf16 %v1649_v40, %v1648_v37 }
  0x84   : > { %3190 = vmatprep.subr.bf16.mxu1 %v3189_v7 }
  0x85   : > { %3120 = vmatpush3.bf16.msra.mxu0 %v3117_v43  ;;  %v1651_v43 = vld [vmem:[%s4126_s7 + $0x28] sm:$0xff]  ;;  %3192 = vmatpush3.bf16.msra.mxu1 %v3189_v7  ;;  %v1596_v7 = vld [vmem:[%s4122_s3 + $0x60] sm:$0xff] }
  0x86   : > { %3122 = vmatprep.subr.bf16.mxu0 %v3121_v46  ;;  %v3193_v44 = vpack.c.bf16 %v1651_v43, %v1650_v42  ;;  %v1597_v42 = vld [vmem:[%s4122_s3 + $0x68] sm:$0xff] }
  0x88   : > { %2710 = vmatmul.mubr.f32.vlgmr.msra.gmra.mrb[0].mxu0 %v3674_v10  ;;  %v3133_v10 = vpack.c.bf16 %v2109_v54, %v2108_v53  ;;  %3194 = vmatprep.subr.bf16.mxu1 %v3193_v44  ;;  %v4029_v53 = vld [vmem:[%s4125_s6] ss:$0 sm:$0xff] }
  0x89   : > { %3124 = vmatpush3.bf16.msra.mxu0 %v3121_v46  ;;  %2712 = vmatprep.mubr.f32.mxu0 %v3693_v20  ;;  %v2110_v20 = vld [vmem:[%s4120_s1 + $0x3c0] sm:$0xff]  ;;  %v1653_v46 = vld [vmem:[%s4126_s7 + $0x38] sm:$0xff] }
  0x8a   : > { %3126 = vmatprep.subr.bf16.mxu0 %v3125_v49  ;;  %v3197_v47 = vpack.c.bf16 %v1653_v46, %v1652_v45  ;;  %3196 = vmatpush3.bf16.msra.mxu1 %v3193_v44  ;;  %v1607_v44 = vld [vmem:[%s4020_s26 + $0x38] sm:$0xff]  ;;  %v3241_v46 = vpack.c.bf16 %v1597_v42, %v1596_v7 }
  0x8c   : > { %2713 = vmatmul.mubr.f32.gmra.mrb[2].mxu0 %v3696_v22  ;;  %v3137_v22 = vpack.c.bf16 %v2111_v55, %v2110_v20  ;;  %3198 = vmatprep.subr.bf16.mxu1 %v3197_v47 }
  0x8d   : > { %3128 = vmatpush3.bf16.msra.mxu0 %v3125_v49  ;;  %2715 = vmatprep.mubr.f32.mxu0 %v3715_v32  ;;  %v2112_v32 = vld [vmem:[%s4120_s1 + $0x3d0] sm:$0xff]  ;;  %v1657_v49 = vld [vmem:[%s4126_s7 + $0x58] sm:$0xff] }
  0x8e   : > { %3130 = vmatprep.subr.bf16.mxu0 %v3129_v52  ;;  %3200 = vmatpush3.bf16.msra.mxu1 %v3197_v47 }
  0x90   : > { %2716 = vmatmul.mubr.f32.gmra.mrb[4].mxu0 %v3718_v35  ;;  %v3141_v35 = vpack.c.bf16 %v2113_v57, %v2112_v32  ;;  %v1661_v32 = vld [vmem:[%s4126_s7 + $0x78] sm:$0xff] }
  0x91   : > { %3132 = vmatpush3.bf16.msra.mxu0 %v3129_v52  ;;  %2718 = vmatprep.mubr.f32.mxu0 %v3735_v41  ;;  %v2114_v41 = vld [vmem:[%s4120_s1 + $0x3e0] sm:$0xff] }
  0x92   : > { %3134 = vmatprep.subr.bf16.mxu0 %v3133_v10  ;;  %v3145_v59 = vpack.c.bf16 %v2115_v58, %v2114_v41  ;;  %v1600_v52 = vld [vmem:[%s4020_s26] sm:$0xff]  ;;  %v1603_v58 = vld [vmem:[%s4020_s26 + $0x18] sm:$0xff] }
  0x94   : > { %2719 = vmatmul.mubr.f32.gmra.mrb[6].mxu0 %v2077_v56  ;;  %v1602_v56 = vld [vmem:[%s4020_s26 + $0x10] sm:$0xff] }
  0x95   : > { %3136 = vmatpush3.bf16.msra.mxu0 %v3133_v10  ;;  %2753 = vmatprep.mubr.f32.mxu0 %v3538_v6  ;;  %v2117_v6 = vld [vmem:[%s4120_s1 + $0x3f8] sm:$0xff]  ;;  %v1601_v10 = vld [vmem:[%s4020_s26 + $0x8] sm:$0xff] }
  0x96   : > { %3138 = vmatprep.subr.bf16.mxu0 %v3137_v22  ;;  %v3149_v61 = vpack.c.bf16 %v2117_v6, %v2116_v60  ;;  %v1584_v60 = vld [vmem:[%s4122_s3] sm:$0xff]  ;;  %v1585_v6 = vld [vmem:[%s4122_s3 + $0x8] sm:$0xff] }
  0x99   : > { %3140 = vmatpush3.bf16.msra.mxu0 %v3137_v22  ;;  %v1660_v22 = vld [vmem:[%s4126_s7 + $0x70] sm:$0xff] }
  0x9a   : > { %3142 = vmatprep.subr.bf16.mxu0 %v3141_v35 }
  0x9d   : > { %3144 = vmatpush3.bf16.msra.mxu0 %v3141_v35 }
  0x9e   : > { %3146 = vmatprep.subr.bf16.mxu0 %v3145_v59 }
  0xa1   : > { %3148 = vmatpush3.bf16.msra.mxu0 %v3145_v59  ;;  %v3213_v59 = vpack.c.bf16 %v1661_v32, %v1660_v22 }
  0xa2   : > { %3150 = vmatprep.subr.bf16.mxu0 %v3149_v61 }
  0xa5   : > { %3152 = vmatpush3.bf16.msra.mxu0 %v3149_v61 }
  0xa6   : > { %3154 = vmatprep.subr.bf16.mxu0 %v3153_v0 }
  0xa8   : > { %2754 = vmatmul.mubr.f32.vlgmr.msra.gmra.mrb[0].mxu0 %v3541_v8  ;;  %v3165_v8 = vpack.c.bf16 %v2133_v14, %v2132_v11  ;;  %v1588_v11 = vld [vmem:[%s4122_s3 + $0x20] sm:$0xff]  ;;  %v1589_v14 = vld [vmem:[%s4122_s3 + $0x28] sm:$0xff] }
  0xa9   : > { %3156 = vmatpush3.bf16.msra.mxu0 %v3153_v0  ;;  %2756 = vmatprep.mubr.f32.mxu0 %v3560_v16  ;;  %v2134_v16 = vld [vmem:[%s4120_s1 + $0x440] sm:$0xff]  ;;  %v3217_v0 = vpack.c.bf16 %v1585_v6, %v1584_v60 }
  0xaa   : > { %3158 = vmatprep.subr.bf16.mxu0 %v3157_v3 }
  0xac   : > { %2757 = vmatmul.mubr.f32.gmra.mrb[2].mxu0 %v3563_v18  ;;  %v3169_v18 = vpack.c.bf16 %v2135_v15, %v2134_v16  ;;  %v3225_v16 = vpack.c.bf16 %v1589_v14, %v1588_v11  ;;  %v1590_v15 = vld [vmem:[%s4122_s3 + $0x30] sm:$0xff] }
  0xad   : > { %3160 = vmatpush3.bf16.msra.mxu0 %v3157_v3  ;;  %2759 = vmatprep.mubr.f32.mxu0 %v3582_v26  ;;  %v2136_v26 = vld [vmem:[%s4120_s1 + $0x450] sm:$0xff] }
  0xae   : > { %3162 = vmatprep.subr.bf16.mxu0 %v3161_v9 }
  0xb0   : > { %2760 = vmatmul.mubr.f32.gmra.mrb[4].mxu0 %v3585_v28  ;;  %v3173_v28 = vpack.c.bf16 %v2137_v19, %v2136_v26  ;;  %v1592_v26 = vld [vmem:[%s4122_s3 + $0x40] sm:$0xff]  ;;  %v1593_v19 = vld [vmem:[%s4122_s3 + $0x48] sm:$0xff] }
  0xb1   : > { %3164 = vmatpush3.bf16.msra.mxu0 %v3161_v9  ;;  %2762 = vmatprep.mubr.f32.mxu0 %v3602_v34  ;;  %v2138_v34 = vld [vmem:[%s4120_s1 + $0x460] sm:$0xff]  ;;  %v3221_v9 = vpack.c.bf16 %v1587_v2, %v1586_v1 }
  0xb2   : > { %3166 = vmatprep.subr.bf16.mxu0 %v3165_v8  ;;  %v3177_v25 = vpack.c.bf16 %v2139_v21, %v2138_v34  ;;  %v1594_v34 = vld [vmem:[%s4122_s3 + $0x50] sm:$0xff]  ;;  %v1595_v21 = vld [vmem:[%s4122_s3 + $0x58] sm:$0xff] }
  0xb4   : > { %2763 = vmatmul.mubr.f32.gmra.mrb[6].mxu0 %v2101_v17  ;;  %v1591_v17 = vld [vmem:[%s4122_s3 + $0x38] sm:$0xff] }
  0xb5   : > { %3168 = vmatpush3.bf16.msra.mxu0 %v3165_v8  ;;  %2797 = vmatprep.mubr.f32.mxu0 %v3792_v12  ;;  %v2141_v12 = vld [vmem:[%s4120_s1 + $0x478] sm:$0xff] }
  0xb6   : > { %3170 = vmatprep.subr.bf16.mxu0 %v3169_v18  ;;  %v3181_v29 = vpack.c.bf16 %v2141_v12, %v2140_v27  ;;  %v1604_v27 = vld [vmem:[%s4020_s26 + $0x20] sm:$0xff] }
  0xb9   : > { %3172 = vmatpush3.bf16.msra.mxu0 %v3169_v18  ;;  %v3229_v18 = vpack.c.bf16 %v1591_v17, %v1590_v15 }
  0xba   : > { %3174 = vmatprep.subr.bf16.mxu0 %v3173_v28 }
  0xbd   : > { %3176 = vmatpush3.bf16.msra.mxu0 %v3173_v28  ;;  %v3233_v28 = vpack.c.bf16 %v1593_v19, %v1592_v26 }
  0xbe   : > { %3178 = vmatprep.subr.bf16.mxu0 %v3177_v25 }
  0xc1   : > { %3180 = vmatpush3.bf16.msra.mxu0 %v3177_v25  ;;  %v3237_v25 = vpack.c.bf16 %v1595_v21, %v1594_v34 }
  0xc2   : > { %3182 = vmatprep.subr.bf16.mxu0 %v3181_v29 }
  0xc5   : > { %3184 = vmatpush3.bf16.msra.mxu0 %v3181_v29  ;;  %v1605_v29 = vld [vmem:[%s4020_s26 + $0x28] sm:$0xff] }
  0xc8   : > { %2798 = vmatmul.mubr.f32.vlgmr.msra.gmra.mrb[0].mxu0 %v3795_v13  ;;  %v1654_v13 = vld [vmem:[%s4126_s7 + $0x40] sm:$0xff] }
  0xc9   : > { %2800 = vmatprep.mubr.f32.mxu0 %v3808_v23  ;;  %v3201_v23 = vpack.c.bf16 %v1655_v48, %v1654_v13 }
  0xcb   : > { %3202 = vmatprep.subr.bf16.mxu1 %v3201_v23 }
  0xcc   : > { %2801 = vmatmul.mubr.f32.gmra.mrb[2].mxu0 %v3811_v24  ;;  %v1656_v24 = vld [vmem:[%s4126_s7 + $0x50] sm:$0xff]  ;;  %3204 = vmatpush3.bf16.msra.mxu1 %v3201_v23 }
  0xcd   : > { %2803 = vmatprep.mubr.f32.mxu0 %v3823_v31  ;;  %v2125_v31 = vld [vmem:[%s3430_s14 + $0x81] sm:$0xff]  ;;  %v3205_v50 = vpack.c.bf16 %v1657_v49, %v1656_v24  ;;  %v1598_v24 = vld [vmem:[%s4122_s3 + $0x70] sm:$0xff]  ;;  %v1599_v49 = vld [vmem:[%s4122_s3 + $0x78] sm:$0xff] }
  0xcf   : > { %3206 = vmatprep.subr.bf16.mxu1 %v3205_v50 }
  0xd0   : > { %2804 = vmatmul.mubr.f32.gmra.mrb[4].mxu0 %v3826_v33  ;;  %v4010_v33 = vld [vmem:[%s4124_s5] ss:$0 sm:$0xff]  ;;  %3208 = vmatpush3.bf16.msra.mxu1 %v3205_v50  ;;  %v3245_v50 = vpack.c.bf16 %v1599_v49, %v1598_v24 }
  0xd1   : > { %2806 = vmatprep.mubr.f32.mxu0 %v3838_v39  ;;  %v1659_v39 = vld [vmem:[%s4126_s7 + $0x68] sm:$0xff]  ;;  %v1615_v54 = vmul.f32 %v4010_v33, %v1600_v52  ;;  %v1616_v35 = vmul.f32 %v4010_v33, %v1601_v10  ;;  %v1617_v41 = vmul.f32 %v4010_v33, %v1602_v56  ;;  %v1618_v62 = vmul.f32 %v4010_v33, %v1603_v58  ;;  %v2142_v56 = vld [vmem:[%s4121_s2] ss:$0 sm:$0xff] }
  0xd2   : > { %v3209_v20 = vpack.c.bf16 %v1659_v39, %v1658_v51  ;;  %v1619_v12 = vmul.f32 %v4010_v33, %v1604_v27  ;;  %v1620_v30 = vmul.f32 %v4010_v33, %v1605_v29  ;;  %v1621_v43 = vmul.f32 %v4010_v33, %v1606_v38 }
  0xd3   : > { %v1630_v55 = vadd.f32 %v4029_v53, %v1615_v54  ;;  %v1631_v61 = vadd.f32 %v4029_v53, %v1616_v35  ;;  %v1632_v63 = vadd.f32 %v4029_v53, %v1617_v41  ;;  %v1633_v4 = vadd.f32 %v4029_v53, %v1618_v62 }
  0xd4   : > { %2807 = vmatmul.mubr.f32.gmra.mrb[6].mxu0 %v2125_v31  ;;  %3210 = vmatprep.subr.bf16.mxu1 %v3209_v20  ;;  %v1634_v36 = vadd.f32 %v4029_v53, %v1619_v12  ;;  %v1635_v37 = vadd.f32 %v4029_v53, %v1620_v30  ;;  %v1622_v47 = vmul.f32 %v4010_v33, %v1607_v44 }
  0xd5   : > { %v1638_v57 = vmax.f32 %v1630_v55, 0.0  ;;  %3212 = vmatpush3.bf16.msra.mxu1 %v3209_v20  ;;  %v1639_v3 = vmax.f32 %v1631_v61, 0.0  ;;  %v1640_v5 = vmax.f32 %v1632_v63, 0.0  ;;  %v1641_v8 = vmax.f32 %v1633_v4, 0.0 }
  0xd6   : > { %3214 = vmatprep.subr.bf16.mxu1 %v3213_v59  ;;  %v1642_v40 = vmax.f32 %v1634_v36, 0.0  ;;  %v1643_v45 = vmax.f32 %v1635_v37, 0.0  ;;  %v1636_v13 = vadd.f32 %v4029_v53, %v1621_v43  ;;  %v1637_v48 = vadd.f32 %v4029_v53, %v1622_v47 }
  0xd7   : > { %2841 = vmatprep.mubr.f32.mxu1 %v1638_v57 }
  0xd8   : > { %v1644_v23 = vmax.f32 %v1636_v13, 0.0  ;;  %v1645_v31 = vmax.f32 %v1637_v48, 0.0 }
  0xd9   : > { %3216 = vmatpush3.bf16.msra.mxu1 %v3213_v59 }
  0xda   : > { %3218 = vmatprep.subr.bf16.mxu1 %v3217_v0 }
  0xdc   : > { %2842 = vmatmul.mubr.f32.vlgmr.msra.gmra.mrb[8].mxu1 %v1639_v3 }
  0xdd   : > { %3220 = vmatpush3.bf16.msra.mxu1 %v3217_v0  ;;  %2844 = vmatprep.mubr.f32.mxu1 %v1640_v5 }
  0xde   : > { %3222 = vmatprep.subr.bf16.mxu1 %v3221_v9 }
  0xe0   : > { %2845 = vmatmul.mubr.f32.gmra.mrb[10].mxu1 %v1641_v8 }
  0xe1   : > { %3224 = vmatpush3.bf16.msra.mxu1 %v3221_v9  ;;  %2847 = vmatprep.mubr.f32.mxu1 %v1642_v40 }
  0xe2   : > { %3226 = vmatprep.subr.bf16.mxu1 %v3225_v16 }
  0xe4   : > { %2848 = vmatmul.mubr.f32.gmra.mrb[12].mxu1 %v1643_v45 }
  0xe5   : > { %3228 = vmatpush3.bf16.msra.mxu1 %v3225_v16  ;;  %2850 = vmatprep.mubr.f32.mxu1 %v1644_v23 }
  0xe6   : > { %3230 = vmatprep.subr.bf16.mxu1 %v3229_v18 }
  0xe8   : > { %2851 = vmatmul.mubr.f32.gmra.mrb[14].mxu1 %v1645_v31 }
  0xe9   : > { %3232 = vmatpush3.bf16.msra.mxu1 %v3229_v18 }
  0xea   : > { %3234 = vmatprep.subr.bf16.mxu1 %v3233_v28 }
  0xed   : > { %3236 = vmatpush3.bf16.msra.mxu1 %v3233_v28 }
  0xee   : > { %3238 = vmatprep.subr.bf16.mxu1 %v3237_v25 }
  0xf1   : > { %3240 = vmatpush3.bf16.msra.mxu1 %v3237_v25 }
  0xf2   : > { %3242 = vmatprep.subr.bf16.mxu1 %v3241_v46 }
  0xf5   : > { %3244 = vmatpush3.bf16.msra.mxu1 %v3241_v46 }
  0xf6   : > { %3246 = vmatprep.subr.bf16.mxu1 %v3245_v50 }
  0xf9   : > { %3248 = vmatpush3.bf16.msra.mxu1 %v3245_v50 }
 0x13d   : > { %v2535_v33 = vpop.f32.mrb[0].mxu1 }
 0x13e   : > { %v682_v51 = vpop.f32.mrb[1].mxu1 }
 0x141   : > { %v2538_v39 = vpop.f32.mrb[2].mxu1 }
 0x142   : > { %v692_v52 = vpop.f32.mrb[3].mxu1 }
 0x145   : > { %v2541_v53 = vpop.f32.mrb[4].mxu1 }
 0x146   : > { %v702_v54 = vpop.f32.mrb[5].mxu1 }
 0x149   : > { %v2544_v10 = vpop.f32.mrb[6].mxu1 }
 0x14a   : > { %v712_v20 = vpop.f32.mrb[7].mxu1 }
 0x19b   : > { %v2799_v55 = vpop.f32.mrb[0].mxu0 }
 0x19c   : > { %v3249_v22 = vadd.f32 %v2799_v55, %v2535_v33  ;;  %v1514_v32 = vpop.f32.mrb[1].mxu0 }
 0x19d   : > { %v3250_v57 = vadd.f32 %v1514_v32, %v682_v51 }
 0x19e   : > { %v1569_v35 = vadd.f32 %v3249_v22, %v2142_v56 }
 0x19f   : > { %v1568_v41 = vadd.f32 %v3250_v57, %v2142_v56  ;;  %v2802_v58 = vpop.f32.mrb[2].mxu0 }
 0x1a0   : > { %v3251_v59 = vadd.f32 %v2802_v58, %v2538_v39  ;;  %v1524_v60 = vpop.f32.mrb[3].mxu0  ;;  %v1577_v62 = vmax.f32 %v1569_v35, 0.0 }
 0x1a1   : > { %v1576_v6 = vmax.f32 %v1568_v41, 0.0  ;;  %v3252_v61 = vadd.f32 %v1524_v60, %v692_v52 }
 0x1a2   : > { %v1571_v63 = vadd.f32 %v3251_v59, %v2142_v56 }
 0x1a3   : > { %v1570_v0 = vadd.f32 %v3252_v61, %v2142_v56  ;;  %v2805_v1 = vpop.f32.mrb[4].mxu0  ;;  %2885 = vmatprep.mubr.f32.mxu1 %v1576_v6 }
 0x1a4   : > { %v3253_v2 = vadd.f32 %v2805_v1, %v2541_v53  ;;  %v1534_v3 = vpop.f32.mrb[5].mxu0  ;;  %2886 = vmatmul.mubr.f32.vlgmr.msra.gmra.mrb[8].mxu1 %v1577_v62  ;;  %v1579_v9 = vmax.f32 %v1571_v63, 0.0 }
 0x1a5   : > { %v1578_v4 = vmax.f32 %v1570_v0, 0.0  ;;  %v3254_v5 = vadd.f32 %v1534_v3, %v702_v54 }
 0x1a6   : > { %v1573_v11 = vadd.f32 %v3253_v2, %v2142_v56 }
 0x1a7   : > { %v1572_v14 = vadd.f32 %v3254_v5, %v2142_v56  ;;  %v2808_v8 = vpop.f32.mrb[6].mxu0  ;;  %2888 = vmatprep.mubr.f32.mxu1 %v1578_v4 }
 0x1a8   : > { %v3255_v16 = vadd.f32 %v2808_v8, %v2544_v10  ;;  %v1544_v15 = vpop.f32.mrb[7].mxu0  ;;  %2889 = vmatmul.mubr.f32.gmra.mrb[10].mxu1 %v1579_v9  ;;  %v1581_v26 = vmax.f32 %v1573_v11, 0.0 }
 0x1a9   : > { %v1580_v17 = vmax.f32 %v1572_v14, 0.0  ;;  %v3256_v18 = vadd.f32 %v1544_v15, %v712_v20 }
 0x1aa   : > { %v1575_v19 = vadd.f32 %v3255_v16, %v2142_v56 }
 0x1ab   : > { %v1574_v28 = vadd.f32 %v3256_v18, %v2142_v56  ;;  %2891 = vmatprep.mubr.f32.mxu1 %v1580_v17 }
 0x1ac   : > { %2892 = vmatmul.mubr.f32.gmra.mrb[12].mxu1 %v1581_v26  ;;  %v1583_v21 = vmax.f32 %v1575_v19, 0.0 }
 0x1ad   : > { %v1582_v34 = vmax.f32 %v1574_v28, 0.0 }
 0x1af   : > { %2894 = vmatprep.mubr.f32.mxu1 %v1582_v34 }
 0x1b0   : > { %2895 = vmatmul.mubr.f32.gmra.mrb[14].mxu1 %v1583_v21 }
 0x277   : > { %v2887_v25 = vpop.f32.mrb[8].mxu1 }
 0x278   : > { %1873 = vst [vmem:[%s330_s15 + $0x8] sm:$0xff] %v2887_v25  ;;  %v1833_v27 = vpop.f32.mrb[9].mxu1 }
 0x279   : > { %1872 = vst [vmem:[%s330_s15] sm:$0xff] %v1833_v27 }
 0x27b   : > { %v2890_v12 = vpop.f32.mrb[10].mxu1 }
 0x27c   : > { %1875 = vst [vmem:[%s330_s15 + $0x18] sm:$0xff] %v2890_v12  ;;  %v1843_v29 = vpop.f32.mrb[11].mxu1 }
 0x27d   : > { %1874 = vst [vmem:[%s330_s15 + $0x10] sm:$0xff] %v1843_v29 }
 0x27f   : > { %v2893_v30 = vpop.f32.mrb[12].mxu1 }
 0x280   : > { %1877 = vst [vmem:[%s330_s15 + $0x28] sm:$0xff] %v2893_v30  ;;  %v1853_v36 = vpop.f32.mrb[13].mxu1 }
 0x281   : > { %1876 = vst [vmem:[%s330_s15 + $0x20] sm:$0xff] %v1853_v36 }
 0x283   : > { %v2896_v37 = vpop.f32.mrb[14].mxu1 }
 0x284   : > { %1879 = vst [vmem:[%s330_s15 + $0x38] sm:$0xff] %v2896_v37  ;;  %v1863_v38 = vpop.f32.mrb[15].mxu1 }
 0x285   : > { %1878 = vst [vmem:[%s330_s15 + $0x30] sm:$0xff] %v1863_v38 }
 0x286 PF: > { %s18_s27 = sadd.s32 1, %s3336_s27  }
 0x287   : > { %p15_p5 = scmp.ge.s32.totalorder %s18_s27, 4  }
 0x289   :  { %17 = sbr.rel (!%p15_p5) target bundleno = 1 (0x1), region = 98 }

</bundles_post_ra>
